<compile_context>
chip_gen: v7x
topology: tpu7x:2x2x1
jax: 0.10.0
libtpu: 0.0.40
codegen_flags: <defaults>
</compile_context>

<pallas_src>
import functools

import jax
import jax.numpy as jnp
from jax.experimental import pallas as pl
from jax.experimental.pallas import tpu as pltpu


# ------------------------------ shape constants ----------------------------- #

C1_OUT, C1_PAD = 6, 8          # conv1 output channels, padded to 8 sublanes
K1, K1_PAD = 3 * 25, 80        # conv1 im2col K (75), padded to 80
C2_OUT = 16                    # conv2 output channels (already 8-aligned)
K2 = C1_PAD * 25               # conv2 im2col K over the padded 8 input channels
S2 = 5 * 5                     # conv2 pooled spatial size per image
NF = 128                       # all FC widths padded to 128 lanes


# ------------------------------- Pallas kernels ------------------------------ #

def _conv_relu_pool_kernel(p_ref, w_ref, b_ref, o_ref):
    """Fused conv (as matmul) + bias + ReLU + 2x2/stride-2 max-pool.

    p_ref: (4, K, P) im2col patches, one slab per pool offset (ph, pw).
    w_ref: (O, K)    conv weights (PyTorch (O, C, KH, KW) flattened, zero-padded).
    b_ref: (O, 1)    bias.
    o_ref: (O, P)    P = B*Hp*Wp pooled output, channel-major.
    """
    w = w_ref[...]
    m = jnp.dot(w, p_ref[0], preferred_element_type=jnp.float32)
    for q in range(1, 4):
        m = jnp.maximum(m, jnp.dot(w, p_ref[q], preferred_element_type=jnp.float32))
    # relu(max_q(w@p_q) + b) == max_q(relu(w@p_q + b)): bias is shared, relu monotone.
    o_ref[...] = jnp.maximum(m + b_ref[...], 0.0).astype(o_ref.dtype)


def conv_relu_pool(patches, w, b):
    O = w.shape[0]
    P = patches.shape[-1]
    return pl.pallas_call(
        _conv_relu_pool_kernel,
        out_shape=jax.ShapeDtypeStruct((O, P), jnp.float32),
        in_specs=[pl.BlockSpec(memory_space=pltpu.MemorySpace.VMEM)] * 3,
        out_specs=pl.BlockSpec(memory_space=pltpu.MemorySpace.VMEM),
    )(patches, w, b)


def _fc_stack_kernel(x_ref, w1_ref, b1_ref, w2_ref, b2_ref, w3_ref, b3_ref, o_ref):
    """fc1 + ReLU + fc2 + ReLU + fc3 fused; all weights VMEM-resident.

    x_ref:  (C2, B, S) channel-major conv2 output (no wrapper-side transpose).
    w1_ref: (C2, S, NF) fc1 weights with the (c, s) flatten permutation folded in.
    w2_ref/w3_ref: (NF, NF); biases (1, NF).  o_ref: (B, NF); logits = o[:, :10].
    """
    C2, B, S = x_ref.shape
    nf = w1_ref.shape[-1]
    acc = jnp.zeros((B, nf), jnp.float32)
    for c in range(C2):   # performs the (c,b,s)->(b, c*S+s) reorder inside the contraction
        acc = acc + jnp.dot(x_ref[c], w1_ref[c], preferred_element_type=jnp.float32)
    h = jnp.maximum(acc + b1_ref[...], 0.0)
    h = jnp.maximum(jnp.dot(h, w2_ref[...], preferred_element_type=jnp.float32)
                    + b2_ref[...], 0.0)
    o_ref[...] = (jnp.dot(h, w3_ref[...], preferred_element_type=jnp.float32)
                  + b3_ref[...]).astype(o_ref.dtype)


def fc_stack(x3, w1, b1, w2, b2, w3, b3):
    B = x3.shape[1]
    return pl.pallas_call(
        _fc_stack_kernel,
        out_shape=jax.ShapeDtypeStruct((B, NF), jnp.float32),
        in_specs=[pl.BlockSpec(memory_space=pltpu.MemorySpace.VMEM)] * 7,
        out_specs=pl.BlockSpec(memory_space=pltpu.MemorySpace.VMEM),
    )(x3, w1, b1, w2, b2, w3, b3)


# ------------------------------ glue (XLA side) ------------------------------ #

def pool_im2col(x_cmajor, kh, kw, k_pad):
    """im2col with the 2x2/stride-2 pool offsets pulled out front.

    x_cmajor: (C, B, H, W) channel-major activation.
    Returns (4, k_pad, B*Hp*Wp) where row k = c*kh*kw + ki*kw + kj (PyTorch weight
    order) and column p = b*Hp*Wp + h2*Wp + w2.
    """
    C, B, H, W = x_cmajor.shape
    Ho, Wo = H - kh + 1, W - kw + 1
    Hp, Wp = Ho // 2, Wo // 2
    slabs = []
    for ph in range(2):
        for pw in range(2):
            cols = []
            for ki in range(kh):
                for kj in range(kw):
                    r0, c0 = ki + ph, kj + pw
                    cols.append(x_cmajor[:, :, r0:r0 + 2 * Hp:2, c0:c0 + 2 * Wp:2])
            pq = jnp.stack(cols, axis=1)                     # (C, kh*kw, B, Hp, Wp)
            slabs.append(pq.reshape(C * kh * kw, B * Hp * Wp))
    p = jnp.stack(slabs, axis=0)                             # (4, C*kh*kw, B*Hp*Wp)
    k = C * kh * kw
    if k_pad > k:
        p = jnp.pad(p, ((0, 0), (0, k_pad - k), (0, 0)))
    return p, Hp, Wp


def network_forward(x, kp):
    """x: (B, 3, 32, 32) NCHW. Returns logits (B, 10). Matches the PyTorch forward."""
    B = x.shape[0]
    xc = x.transpose(1, 0, 2, 3)                             # (3, B, 32, 32) channel-major

    # pool(relu(conv1(x)))  — fused in one Pallas call
    p1, h1, w1s = pool_im2col(xc, 5, 5, K1_PAD)              # (4, 80, B*196)
    a1 = conv_relu_pool(p1, kp["conv1_w"], kp["conv1_b"])    # (8, B*196)
    a1 = a1.reshape(C1_PAD, B, h1, w1s)                      # channel-major, no transpose

    # pool(relu(conv2(x)))  — fused in one Pallas call
    p2, h2, w2s = pool_im2col(a1, 5, 5, K2)                  # (4, 200, B*25)
    a2 = conv_relu_pool(p2, kp["conv2_w"], kp["conv2_b"])    # (16, B*25)
    a2 = a2.reshape(C2_OUT, B, h2 * w2s)                     # (16, B, 25)

    # fc1 + relu + fc2 + relu + fc3 — fused in one Pallas call; slice padded logits
    out = fc_stack(a2, kp["fc1_w"], kp["fc1_b"], kp["fc2_w"], kp["fc2_b"],
                   kp["fc3_w"], kp["fc3_b"])                 # (B, 128)
    return out[:, :10]


# -------------------------------- parameters --------------------------------- #

def init_params(key):
    """PyTorch-layout params, default-init style U(-1/sqrt(fan_in), +...)."""
    def uniform(k, shape, fan_in):
        bound = 1.0 / jnp.sqrt(jnp.float32(fan_in))
        return jax.random.uniform(k, shape, jnp.float32, -bound, bound)

    ks = jax.random.split(key, 10)
    return {
        "conv1_w": uniform(ks[0], (6, 3, 5, 5), 75),
        "conv1_b": uniform(ks[1], (6,), 75),
        "conv2_w": uniform(ks[2], (16, 6, 5, 5), 150),
        "conv2_b": uniform(ks[3], (16,), 150),
        "fc1_w": uniform(ks[4], (400, 120), 400),   # (in, out) for x @ w
        "fc1_b": uniform(ks[5], (120,), 400),
        "fc2_w": uniform(ks[6], (120, 84), 120),
        "fc2_b": uniform(ks[7], (84,), 120),
        "fc3_w": uniform(ks[8], (84, 10), 84),
        "fc3_b": uniform(ks[9], (10,), 84),
    }


def prepare_params(p):
    """One-time (init-time) repack: zero-pad to (8,128)-friendly shapes and fold
    the conv2->fc1 flatten permutation into the fc1 weight layout."""
    # conv1: (6,3,5,5) -> (8, 80); pads are zero so padded out-channels stay 0.
    w1 = jnp.pad(p["conv1_w"].reshape(C1_OUT, K1),
                 ((0, C1_PAD - C1_OUT), (0, K1_PAD - K1)))
    b1 = jnp.pad(p["conv1_b"], (0, C1_PAD - C1_OUT)).reshape(C1_PAD, 1)
    # conv2: pad input channels 6 -> 8 (they receive zeros anyway) -> (16, 200).
    w2 = jnp.pad(p["conv2_w"], ((0, 0), (0, C1_PAD - 6), (0, 0), (0, 0))).reshape(C2_OUT, K2)
    b2 = p["conv2_b"].reshape(C2_OUT, 1)
    # fc1: (400, 120) -> (16, 25, 128) with k = c*25 + s split as (c, s).
    f1 = jnp.pad(p["fc1_w"], ((0, 0), (0, NF - 120))).reshape(C2_OUT, S2, NF)
    fb1 = jnp.pad(p["fc1_b"], (0, NF - 120)).reshape(1, NF)
    f2 = jnp.pad(p["fc2_w"], ((0, NF - 120), (0, NF - 84)))
    fb2 = jnp.pad(p["fc2_b"], (0, NF - 84)).reshape(1, NF)
    f3 = jnp.pad(p["fc3_w"], ((0, NF - 84), (0, NF - 10)))
    fb3 = jnp.pad(p["fc3_b"], (0, NF - 10)).reshape(1, NF)
    return {
        "conv1_w": w1, "conv1_b": b1,
        "conv2_w": w2, "conv2_b": b2,
        "fc1_w": f1, "fc1_b": fb1,
        "fc2_w": f2, "fc2_b": fb2,
        "fc3_w": f3, "fc3_b": fb3,
    }


# ----------------------------------- main ------------------------------------ #

if __name__ == "__main__":
    key = jax.random.PRNGKey(0)
    k_params, k_x = jax.random.split(key)
    params = init_params(k_params)
    kparams = prepare_params(params)   # done once, outside the jitted forward

    # Network implies 3x32x32 inputs (conv5 -> pool -> conv5 -> pool -> 16*5*5).
    x = jax.random.normal(k_x, (2, 3, 32, 32), dtype=jnp.float32)

    out = jax.jit(network_forward)(x, kparams)
    out = jax.block_until_ready(out)

    assert out.shape == (2, 10), out.shape
    assert out.dtype == jnp.float32
    print("KERNEL_OK")
</pallas_src>

<mosaic_0001>
module attributes {stable_mosaic.version = 11 : i64} {
  func.func @_conv_relu_pool_kernel(%arg0: memref<4x80x392xf32, #tpu.memory_space<vmem>>, %arg1: memref<8x80xf32, #tpu.memory_space<vmem>>, %arg2: memref<8x1xf32, #tpu.memory_space<vmem>>, %arg3: memref<8x392xf32, #tpu.memory_space<vmem>>) attributes {dimension_semantics = [], scalar_prefetch = 0 : i64, scratch_operands = 0 : i64, tpu.core_type = #tpu.core_type<tc>} {
    %c0 = arith.constant 0 : index
    %c0_0 = arith.constant 0 : index
    %0 = vector.load %arg1[%c0, %c0_0] : memref<8x80xf32, #tpu.memory_space<vmem>>, vector<8x80xf32>
    %c0_1 = arith.constant 0 : index
    %c0_2 = arith.constant 0 : index
    %c0_3 = arith.constant 0 : index
    %1 = vector.load %arg0[%c0_1, %c0_2, %c0_3] : memref<4x80x392xf32, #tpu.memory_space<vmem>>, vector<1x80x392xf32>
    %2 = vector.shape_cast %1 : vector<1x80x392xf32> to vector<80x392xf32>
    %cst = arith.constant dense<0.000000e+00> : vector<8x392xf32>
    %3 = tpu.matmul %0, %2, %cst {dimension_numbers = #tpu.dot_dimension_numbers<[1], [0], [0], [1], [0, 0, 1, 1], [], []>} : vector<8x80xf32>, vector<80x392xf32>, vector<8x392xf32> -> vector<8x392xf32>
    %c1 = arith.constant 1 : index
    %c0_4 = arith.constant 0 : index
    %c0_5 = arith.constant 0 : index
    %4 = vector.load %arg0[%c1, %c0_4, %c0_5] : memref<4x80x392xf32, #tpu.memory_space<vmem>>, vector<1x80x392xf32>
    %5 = vector.shape_cast %4 : vector<1x80x392xf32> to vector<80x392xf32>
    %cst_6 = arith.constant dense<0.000000e+00> : vector<8x392xf32>
    %6 = tpu.matmul %0, %5, %cst_6 {dimension_numbers = #tpu.dot_dimension_numbers<[1], [0], [0], [1], [0, 0, 1, 1], [], []>} : vector<8x80xf32>, vector<80x392xf32>, vector<8x392xf32> -> vector<8x392xf32>
    %7 = arith.maximumf %3, %6 : vector<8x392xf32>
    %c2 = arith.constant 2 : index
    %c0_7 = arith.constant 0 : index
    %c0_8 = arith.constant 0 : index
    %8 = vector.load %arg0[%c2, %c0_7, %c0_8] : memref<4x80x392xf32, #tpu.memory_space<vmem>>, vector<1x80x392xf32>
    %9 = vector.shape_cast %8 : vector<1x80x392xf32> to vector<80x392xf32>
    %cst_9 = arith.constant dense<0.000000e+00> : vector<8x392xf32>
    %10 = tpu.matmul %0, %9, %cst_9 {dimension_numbers = #tpu.dot_dimension_numbers<[1], [0], [0], [1], [0, 0, 1, 1], [], []>} : vector<8x80xf32>, vector<80x392xf32>, vector<8x392xf32> -> vector<8x392xf32>
    %11 = arith.maximumf %7, %10 : vector<8x392xf32>
    %c3 = arith.constant 3 : index
    %c0_10 = arith.constant 0 : index
    %c0_11 = arith.constant 0 : index
    %12 = vector.load %arg0[%c3, %c0_10, %c0_11] : memref<4x80x392xf32, #tpu.memory_space<vmem>>, vector<1x80x392xf32>
    %13 = vector.shape_cast %12 : vector<1x80x392xf32> to vector<80x392xf32>
    %cst_12 = arith.constant dense<0.000000e+00> : vector<8x392xf32>
    %14 = tpu.matmul %0, %13, %cst_12 {dimension_numbers = #tpu.dot_dimension_numbers<[1], [0], [0], [1], [0, 0, 1, 1], [], []>} : vector<8x80xf32>, vector<80x392xf32>, vector<8x392xf32> -> vector<8x392xf32>
    %15 = arith.maximumf %11, %14 : vector<8x392xf32>
    %c0_13 = arith.constant 0 : index
    %c0_14 = arith.constant 0 : index
    %16 = vector.load %arg2[%c0_13, %c0_14] : memref<8x1xf32, #tpu.memory_space<vmem>>, vector<8x1xf32>
    %17 = vector.broadcast %16 : vector<8x1xf32> to vector<8x392xf32>
    %18 = arith.addf %15, %17 : vector<8x392xf32>
    %cst_15 = arith.constant 0.000000e+00 : f32
    %19 = vector.broadcast %cst_15 : f32 to vector<8x392xf32>
    %20 = arith.maximumf %18, %19 : vector<8x392xf32>
    %c0_16 = arith.constant 0 : index
    %c0_17 = arith.constant 0 : index
    %21 = vector.load %arg3[%c0_16, %c0_17] : memref<8x392xf32, #tpu.memory_space<vmem>>, vector<8x392xf32>
    tpu.vector_store %arg3[%c0_16, %c0_17], %20 {strides = array<i32>} : memref<8x392xf32, #tpu.memory_space<vmem>>, vector<8x392xf32>,
    return
  }
}

module attributes {stable_mosaic.version = 11 : i64} {
  func.func @_conv_relu_pool_kernel(%arg0: memref<4x200x50xf32, #tpu.memory_space<vmem>>, %arg1: memref<16x200xf32, #tpu.memory_space<vmem>>, %arg2: memref<16x1xf32, #tpu.memory_space<vmem>>, %arg3: memref<16x50xf32, #tpu.memory_space<vmem>>) attributes {dimension_semantics = [], scalar_prefetch = 0 : i64, scratch_operands = 0 : i64, tpu.core_type = #tpu.core_type<tc>} {
    %c0 = arith.constant 0 : index
    %c0_0 = arith.constant 0 : index
    %0 = vector.load %arg1[%c0, %c0_0] : memref<16x200xf32, #tpu.memory_space<vmem>>, vector<16x200xf32>
    %c0_1 = arith.constant 0 : index
    %c0_2 = arith.constant 0 : index
    %c0_3 = arith.constant 0 : index
    %1 = vector.load %arg0[%c0_1, %c0_2, %c0_3] : memref<4x200x50xf32, #tpu.memory_space<vmem>>, vector<1x200x50xf32>
    %2 = vector.shape_cast %1 : vector<1x200x50xf32> to vector<200x50xf32>
    %cst = arith.constant dense<0.000000e+00> : vector<16x50xf32>
    %3 = tpu.matmul %0, %2, %cst {dimension_numbers = #tpu.dot_dimension_numbers<[1], [0], [0], [1], [0, 0, 1, 1], [], []>} : vector<16x200xf32>, vector<200x50xf32>, vector<16x50xf32> -> vector<16x50xf32>
    %c1 = arith.constant 1 : index
    %c0_4 = arith.constant 0 : index
    %c0_5 = arith.constant 0 : index
    %4 = vector.load %arg0[%c1, %c0_4, %c0_5] : memref<4x200x50xf32, #tpu.memory_space<vmem>>, vector<1x200x50xf32>
    %5 = vector.shape_cast %4 : vector<1x200x50xf32> to vector<200x50xf32>
    %cst_6 = arith.constant dense<0.000000e+00> : vector<16x50xf32>
    %6 = tpu.matmul %0, %5, %cst_6 {dimension_numbers = #tpu.dot_dimension_numbers<[1], [0], [0], [1], [0, 0, 1, 1], [], []>} : vector<16x200xf32>, vector<200x50xf32>, vector<16x50xf32> -> vector<16x50xf32>
    %7 = arith.maximumf %3, %6 : vector<16x50xf32>
    %c2 = arith.constant 2 : index
    %c0_7 = arith.constant 0 : index
    %c0_8 = arith.constant 0 : index
    %8 = vector.load %arg0[%c2, %c0_7, %c0_8] : memref<4x200x50xf32, #tpu.memory_space<vmem>>, vector<1x200x50xf32>
    %9 = vector.shape_cast %8 : vector<1x200x50xf32> to vector<200x50xf32>
    %cst_9 = arith.constant dense<0.000000e+00> : vector<16x50xf32>
    %10 = tpu.matmul %0, %9, %cst_9 {dimension_numbers = #tpu.dot_dimension_numbers<[1], [0], [0], [1], [0, 0, 1, 1], [], []>} : vector<16x200xf32>, vector<200x50xf32>, vector<16x50xf32> -> vector<16x50xf32>
    %11 = arith.maximumf %7, %10 : vector<16x50xf32>
    %c3 = arith.constant 3 : index
    %c0_10 = arith.constant 0 : index
    %c0_11 = arith.constant 0 : index
    %12 = vector.load %arg0[%c3, %c0_10, %c0_11] : memref<4x200x50xf32, #tpu.memory_space<vmem>>, vector<1x200x50xf32>
    %13 = vector.shape_cast %12 : vector<1x200x50xf32> to vector<200x50xf32>
    %cst_12 = arith.constant dense<0.000000e+00> : vector<16x50xf32>
    %14 = tpu.matmul %0, %13, %cst_12 {dimension_numbers = #tpu.dot_dimension_numbers<[1], [0], [0], [1], [0, 0, 1, 1], [], []>} : vector<16x200xf32>, vector<200x50xf32>, vector<16x50xf32> -> vector<16x50xf32>
    %15 = arith.maximumf %11, %14 : vector<16x50xf32>
    %c0_13 = arith.constant 0 : index
    %c0_14 = arith.constant 0 : index
    %16 = vector.load %arg2[%c0_13, %c0_14] : memref<16x1xf32, #tpu.memory_space<vmem>>, vector<16x1xf32>
    %17 = vector.broadcast %16 : vector<16x1xf32> to vector<16x50xf32>
    %18 = arith.addf %15, %17 : vector<16x50xf32>
    %cst_15 = arith.constant 0.000000e+00 : f32
    %19 = vector.broadcast %cst_15 : f32 to vector<16x50xf32>
    %20 = arith.maximumf %18, %19 : vector<16x50xf32>
    %c0_16 = arith.constant 0 : index
    %c0_17 = arith.constant 0 : index
    %21 = vector.load %arg3[%c0_16, %c0_17] : memref<16x50xf32, #tpu.memory_space<vmem>>, vector<16x50xf32>
    tpu.vector_store %arg3[%c0_16, %c0_17], %20 {strides = array<i32>} : memref<16x50xf32, #tpu.memory_space<vmem>>, vector<16x50xf32>,
    return
  }
}

module attributes {stable_mosaic.version = 11 : i64} {
  func.func @_fc_stack_kernel(%arg0: memref<16x2x25xf32, #tpu.memory_space<vmem>>, %arg1: memref<16x25x128xf32, #tpu.memory_space<vmem>>, %arg2: memref<1x128xf32, #tpu.memory_space<vmem>>, %arg3: memref<128x128xf32, #tpu.memory_space<vmem>>, %arg4: memref<1x128xf32, #tpu.memory_space<vmem>>, %arg5: memref<128x128xf32, #tpu.memory_space<vmem>>, %arg6: memref<1x128xf32, #tpu.memory_space<vmem>>, %arg7: memref<2x128xf32, #tpu.memory_space<vmem>>) attributes {dimension_semantics = [], scalar_prefetch = 0 : i64, scratch_operands = 0 : i64, tpu.core_type = #tpu.core_type<tc>} {
    %cst = arith.constant 0.000000e+00 : f32
    %0 = vector.broadcast %cst : f32 to vector<2x128xf32>
    %c0 = arith.constant 0 : index
    %c0_0 = arith.constant 0 : index
    %c0_1 = arith.constant 0 : index
    %1 = vector.load %arg0[%c0, %c0_0, %c0_1] : memref<16x2x25xf32, #tpu.memory_space<vmem>>, vector<1x2x25xf32>
    %2 = vector.shape_cast %1 : vector<1x2x25xf32> to vector<2x25xf32>
    %c0_2 = arith.constant 0 : index
    %c0_3 = arith.constant 0 : index
    %c0_4 = arith.constant 0 : index
    %3 = vector.load %arg1[%c0_2, %c0_3, %c0_4] : memref<16x25x128xf32, #tpu.memory_space<vmem>>, vector<1x25x128xf32>
    %4 = vector.shape_cast %3 : vector<1x25x128xf32> to vector<25x128xf32>
    %cst_5 = arith.constant dense<0.000000e+00> : vector<2x128xf32>
    %5 = tpu.matmul %2, %4, %cst_5 {dimension_numbers = #tpu.dot_dimension_numbers<[1], [0], [0], [1], [0, 0, 1, 1], [], []>} : vector<2x25xf32>, vector<25x128xf32>, vector<2x128xf32> -> vector<2x128xf32>
    %6 = arith.addf %0, %5 : vector<2x128xf32>
    %c1 = arith.constant 1 : index
    %c0_6 = arith.constant 0 : index
    %c0_7 = arith.constant 0 : index
    %7 = vector.load %arg0[%c1, %c0_6, %c0_7] : memref<16x2x25xf32, #tpu.memory_space<vmem>>, vector<1x2x25xf32>
    %8 = vector.shape_cast %7 : vector<1x2x25xf32> to vector<2x25xf32>
    %c1_8 = arith.constant 1 : index
    %c0_9 = arith.constant 0 : index
    %c0_10 = arith.constant 0 : index
    %9 = vector.load %arg1[%c1_8, %c0_9, %c0_10] : memref<16x25x128xf32, #tpu.memory_space<vmem>>, vector<1x25x128xf32>
    %10 = vector.shape_cast %9 : vector<1x25x128xf32> to vector<25x128xf32>
    %cst_11 = arith.constant dense<0.000000e+00> : vector<2x128xf32>
    %11 = tpu.matmul %8, %10, %cst_11 {dimension_numbers = #tpu.dot_dimension_numbers<[1], [0], [0], [1], [0, 0, 1, 1], [], []>} : vector<2x25xf32>, vector<25x128xf32>, vector<2x128xf32> -> vector<2x128xf32>
    %12 = arith.addf %6, %11 : vector<2x128xf32>
    %c2 = arith.constant 2 : index
    %c0_12 = arith.constant 0 : index
    %c0_13 = arith.constant 0 : index
    %13 = vector.load %arg0[%c2, %c0_12, %c0_13] : memref<16x2x25xf32, #tpu.memory_space<vmem>>, vector<1x2x25xf32>
    %14 = vector.shape_cast %13 : vector<1x2x25xf32> to vector<2x25xf32>
    %c2_14 = arith.constant 2 : index
    %c0_15 = arith.constant 0 : index
    %c0_16 = arith.constant 0 : index
    %15 = vector.load %arg1[%c2_14, %c0_15, %c0_16] : memref<16x25x128xf32, #tpu.memory_space<vmem>>, vector<1x25x128xf32>
    %16 = vector.shape_cast %15 : vector<1x25x128xf32> to vector<25x128xf32>
    %cst_17 = arith.constant dense<0.000000e+00> : vector<2x128xf32>
    %17 = tpu.matmul %14, %16, %cst_17 {dimension_numbers = #tpu.dot_dimension_numbers<[1], [0], [0], [1], [0, 0, 1, 1], [], []>} : vector<2x25xf32>, vector<25x128xf32>, vector<2x128xf32> -> vector<2x128xf32>
    %18 = arith.addf %12, %17 : vector<2x128xf32>
    %c3 = arith.constant 3 : index
    %c0_18 = arith.constant 0 : index
    %c0_19 = arith.constant 0 : index
    %19 = vector.load %arg0[%c3, %c0_18, %c0_19] : memref<16x2x25xf32, #tpu.memory_space<vmem>>, vector<1x2x25xf32>
    %20 = vector.shape_cast %19 : vector<1x2x25xf32> to vector<2x25xf32>
    %c3_20 = arith.constant 3 : index
    %c0_21 = arith.constant 0 : index
    %c0_22 = arith.constant 0 : index
    %21 = vector.load %arg1[%c3_20, %c0_21, %c0_22] : memref<16x25x128xf32, #tpu.memory_space<vmem>>, vector<1x25x128xf32>
    %22 = vector.shape_cast %21 : vector<1x25x128xf32> to vector<25x128xf32>
    %cst_23 = arith.constant dense<0.000000e+00> : vector<2x128xf32>
    %23 = tpu.matmul %20, %22, %cst_23 {dimension_numbers = #tpu.dot_dimension_numbers<[1], [0], [0], [1], [0, 0, 1, 1], [], []>} : vector<2x25xf32>, vector<25x128xf32>, vector<2x128xf32> -> vector<2x128xf32>
    %24 = arith.addf %18, %23 : vector<2x128xf32>
    %c4 = arith.constant 4 : index
    %c0_24 = arith.constant 0 : index
    %c0_25 = arith.constant 0 : index
    %25 = vector.load %arg0[%c4, %c0_24, %c0_25] : memref<16x2x25xf32, #tpu.memory_space<vmem>>, vector<1x2x25xf32>
    %26 = vector.shape_cast %25 : vector<1x2x25xf32> to vector<2x25xf32>
    %c4_26 = arith.constant 4 : index
    %c0_27 = arith.constant 0 : index
    %c0_28 = arith.constant 0 : index
    %27 = vector.load %arg1[%c4_26, %c0_27, %c0_28] : memref<16x25x128xf32, #tpu.memory_space<vmem>>, vector<1x25x128xf32>
    %28 = vector.shape_cast %27 : vector<1x25x128xf32> to vector<25x128xf32>
    %cst_29 = arith.constant dense<0.000000e+00> : vector<2x128xf32>
    %29 = tpu.matmul %26, %28, %cst_29 {dimension_numbers = #tpu.dot_dimension_numbers<[1], [0], [0], [1], [0, 0, 1, 1], [], []>} : vector<2x25xf32>, vector<25x128xf32>, vector<2x128xf32> -> vector<2x128xf32>
    %30 = arith.addf %24, %29 : vector<2x128xf32>
    %c5 = arith.constant 5 : index
    %c0_30 = arith.constant 0 : index
    %c0_31 = arith.constant 0 : index
    %31 = vector.load %arg0[%c5, %c0_30, %c0_31] : memref<16x2x25xf32, #tpu.memory_space<vmem>>, vector<1x2x25xf32>
    %32 = vector.shape_cast %31 : vector<1x2x25xf32> to vector<2x25xf32>
    %c5_32 = arith.constant 5 : index
    %c0_33 = arith.constant 0 : index
    %c0_34 = arith.constant 0 : index
    %33 = vector.load %arg1[%c5_32, %c0_33, %c0_34] : memref<16x25x128xf32, #tpu.memory_space<vmem>>, vector<1x25x128xf32>
    %34 = vector.shape_cast %33 : vector<1x25x128xf32> to vector<25x128xf32>
    %cst_35 = arith.constant dense<0.000000e+00> : vector<2x128xf32>
    %35 = tpu.matmul %32, %34, %cst_35 {dimension_numbers = #tpu.dot_dimension_numbers<[1], [0], [0], [1], [0, 0, 1, 1], [], []>} : vector<2x25xf32>, vector<25x128xf32>, vector<2x128xf32> -> vector<2x128xf32>
    %36 = arith.addf %30, %35 : vector<2x128xf32>
    %c6 = arith.constant 6 : index
    %c0_36 = arith.constant 0 : index
    %c0_37 = arith.constant 0 : index
    %37 = vector.load %arg0[%c6, %c0_36, %c0_37] : memref<16x2x25xf32, #tpu.memory_space<vmem>>, vector<1x2x25xf32>
    %38 = vector.shape_cast %37 : vector<1x2x25xf32> to vector<2x25xf32>
    %c6_38 = arith.constant 6 : index
    %c0_39 = arith.constant 0 : index
    %c0_40 = arith.constant 0 : index
    %39 = vector.load %arg1[%c6_38, %c0_39, %c0_40] : memref<16x25x128xf32, #tpu.memory_space<vmem>>, vector<1x25x128xf32>
    %40 = vector.shape_cast %39 : vector<1x25x128xf32> to vector<25x128xf32>
    %cst_41 = arith.constant dense<0.000000e+00> : vector<2x128xf32>
    %41 = tpu.matmul %38, %40, %cst_41 {dimension_numbers = #tpu.dot_dimension_numbers<[1], [0], [0], [1], [0, 0, 1, 1], [], []>} : vector<2x25xf32>, vector<25x128xf32>, vector<2x128xf32> -> vector<2x128xf32>
    %42 = arith.addf %36, %41 : vector<2x128xf32>
    %c7 = arith.constant 7 : index
    %c0_42 = arith.constant 0 : index
    %c0_43 = arith.constant 0 : index
    %43 = vector.load %arg0[%c7, %c0_42, %c0_43] : memref<16x2x25xf32, #tpu.memory_space<vmem>>, vector<1x2x25xf32>
    %44 = vector.shape_cast %43 : vector<1x2x25xf32> to vector<2x25xf32>
    %c7_44 = arith.constant 7 : index
    %c0_45 = arith.constant 0 : index
    %c0_46 = arith.constant 0 : index
    %45 = vector.load %arg1[%c7_44, %c0_45, %c0_46] : memref<16x25x128xf32, #tpu.memory_space<vmem>>, vector<1x25x128xf32>
    %46 = vector.shape_cast %45 : vector<1x25x128xf32> to vector<25x128xf32>
    %cst_47 = arith.constant dense<0.000000e+00> : vector<2x128xf32>
    %47 = tpu.matmul %44, %46, %cst_47 {dimension_numbers = #tpu.dot_dimension_numbers<[1], [0], [0], [1], [0, 0, 1, 1], [], []>} : vector<2x25xf32>, vector<25x128xf32>, vector<2x128xf32> -> vector<2x128xf32>
    %48 = arith.addf %42, %47 : vector<2x128xf32>
    %c8 = arith.constant 8 : index
    %c0_48 = arith.constant 0 : index
    %c0_49 = arith.constant 0 : index
    %49 = vector.load %arg0[%c8, %c0_48, %c0_49] : memref<16x2x25xf32, #tpu.memory_space<vmem>>, vector<1x2x25xf32>
    %50 = vector.shape_cast %49 : vector<1x2x25xf32> to vector<2x25xf32>
    %c8_50 = arith.constant 8 : index
    %c0_51 = arith.constant 0 : index
    %c0_52 = arith.constant 0 : index
    %51 = vector.load %arg1[%c8_50, %c0_51, %c0_52] : memref<16x25x128xf32, #tpu.memory_space<vmem>>, vector<1x25x128xf32>
    %52 = vector.shape_cast %51 : vector<1x25x128xf32> to vector<25x128xf32>
    %cst_53 = arith.constant dense<0.000000e+00> : vector<2x128xf32>
    %53 = tpu.matmul %50, %52, %cst_53 {dimension_numbers = #tpu.dot_dimension_numbers<[1], [0], [0], [1], [0, 0, 1, 1], [], []>} : vector<2x25xf32>, vector<25x128xf32>, vector<2x128xf32> -> vector<2x128xf32>
    %54 = arith.addf %48, %53 : vector<2x128xf32>
    %c9 = arith.constant 9 : index
    %c0_54 = arith.constant 0 : index
    %c0_55 = arith.constant 0 : index
    %55 = vector.load %arg0[%c9, %c0_54, %c0_55] : memref<16x2x25xf32, #tpu.memory_space<vmem>>, vector<1x2x25xf32>
    %56 = vector.shape_cast %55 : vector<1x2x25xf32> to vector<2x25xf32>
    %c9_56 = arith.constant 9 : index
    %c0_57 = arith.constant 0 : index
    %c0_58 = arith.constant 0 : index
    %57 = vector.load %arg1[%c9_56, %c0_57, %c0_58] : memref<16x25x128xf32, #tpu.memory_space<vmem>>, vector<1x25x128xf32>
    %58 = vector.shape_cast %57 : vector<1x25x128xf32> to vector<25x128xf32>
    %cst_59 = arith.constant dense<0.000000e+00> : vector<2x128xf32>
    %59 = tpu.matmul %56, %58, %cst_59 {dimension_numbers = #tpu.dot_dimension_numbers<[1], [0], [0], [1], [0, 0, 1, 1], [], []>} : vector<2x25xf32>, vector<25x128xf32>, vector<2x128xf32> -> vector<2x128xf32>
    %60 = arith.addf %54, %59 : vector<2x128xf32>
    %c10 = arith.constant 10 : index
    %c0_60 = arith.constant 0 : index
    %c0_61 = arith.constant 0 : index
    %61 = vector.load %arg0[%c10, %c0_60, %c0_61] : memref<16x2x25xf32, #tpu.memory_space<vmem>>, vector<1x2x25xf32>
    %62 = vector.shape_cast %61 : vector<1x2x25xf32> to vector<2x25xf32>
    %c10_62 = arith.constant 10 : index
    %c0_63 = arith.constant 0 : index
    %c0_64 = arith.constant 0 : index
    %63 = vector.load %arg1[%c10_62, %c0_63, %c0_64] : memref<16x25x128xf32, #tpu.memory_space<vmem>>, vector<1x25x128xf32>
    %64 = vector.shape_cast %63 : vector<1x25x128xf32> to vector<25x128xf32>
    %cst_65 = arith.constant dense<0.000000e+00> : vector<2x128xf32>
    %65 = tpu.matmul %62, %64, %cst_65 {dimension_numbers = #tpu.dot_dimension_numbers<[1], [0], [0], [1], [0, 0, 1, 1], [], []>} : vector<2x25xf32>, vector<25x128xf32>, vector<2x128xf32> -> vector<2x128xf32>
    %66 = arith.addf %60, %65 : vector<2x128xf32>
    %c11 = arith.constant 11 : index
    %c0_66 = arith.constant 0 : index
    %c0_67 = arith.constant 0 : index
    %67 = vector.load %arg0[%c11, %c0_66, %c0_67] : memref<16x2x25xf32, #tpu.memory_space<vmem>>, vector<1x2x25xf32>
    %68 = vector.shape_cast %67 : vector<1x2x25xf32> to vector<2x25xf32>
    %c11_68 = arith.constant 11 : index
    %c0_69 = arith.constant 0 : index
    %c0_70 = arith.constant 0 : index
    %69 = vector.load %arg1[%c11_68, %c0_69, %c0_70] : memref<16x25x128xf32, #tpu.memory_space<vmem>>, vector<1x25x128xf32>
    %70 = vector.shape_cast %69 : vector<1x25x128xf32> to vector<25x128xf32>
    %cst_71 = arith.constant dense<0.000000e+00> : vector<2x128xf32>
    %71 = tpu.matmul %68, %70, %cst_71 {dimension_numbers = #tpu.dot_dimension_numbers<[1], [0], [0], [1], [0, 0, 1, 1], [], []>} : vector<2x25xf32>, vector<25x128xf32>, vector<2x128xf32> -> vector<2x128xf32>
    %72 = arith.addf %66, %71 : vector<2x128xf32>
    %c12 = arith.constant 12 : index
    %c0_72 = arith.constant 0 : index
    %c0_73 = arith.constant 0 : index
    %73 = vector.load %arg0[%c12, %c0_72, %c0_73] : memref<16x2x25xf32, #tpu.memory_space<vmem>>, vector<1x2x25xf32>
    %74 = vector.shape_cast %73 : vector<1x2x25xf32> to vector<2x25xf32>
    %c12_74 = arith.constant 12 : index
    %c0_75 = arith.constant 0 : index
    %c0_76 = arith.constant 0 : index
    %75 = vector.load %arg1[%c12_74, %c0_75, %c0_76] : memref<16x25x128xf32, #tpu.memory_space<vmem>>, vector<1x25x128xf32>
    %76 = vector.shape_cast %75 : vector<1x25x128xf32> to vector<25x128xf32>
    %cst_77 = arith.constant dense<0.000000e+00> : vector<2x128xf32>
    %77 = tpu.matmul %74, %76, %cst_77 {dimension_numbers = #tpu.dot_dimension_numbers<[1], [0], [0], [1], [0, 0, 1, 1], [], []>} : vector<2x25xf32>, vector<25x128xf32>, vector<2x128xf32> -> vector<2x128xf32>
    %78 = arith.addf %72, %77 : vector<2x128xf32>
    %c13 = arith.constant 13 : index
    %c0_78 = arith.constant 0 : index
    %c0_79 = arith.constant 0 : index
    %79 = vector.load %arg0[%c13, %c0_78, %c0_79] : memref<16x2x25xf32, #tpu.memory_space<vmem>>, vector<1x2x25xf32>
    %80 = vector.shape_cast %79 : vector<1x2x25xf32> to vector<2x25xf32>
    %c13_80 = arith.constant 13 : index
    %c0_81 = arith.constant 0 : index
    %c0_82 = arith.constant 0 : index
    %81 = vector.load %arg1[%c13_80, %c0_81, %c0_82] : memref<16x25x128xf32, #tpu.memory_space<vmem>>, vector<1x25x128xf32>
    %82 = vector.shape_cast %81 : vector<1x25x128xf32> to vector<25x128xf32>
    %cst_83 = arith.constant dense<0.000000e+00> : vector<2x128xf32>
    %83 = tpu.matmul %80, %82, %cst_83 {dimension_numbers = #tpu.dot_dimension_numbers<[1], [0], [0], [1], [0, 0, 1, 1], [], []>} : vector<2x25xf32>, vector<25x128xf32>, vector<2x128xf32> -> vector<2x128xf32>
    %84 = arith.addf %78, %83 : vector<2x128xf32>
    %c14 = arith.constant 14 : index
    %c0_84 = arith.constant 0 : index
    %c0_85 = arith.constant 0 : index
    %85 = vector.load %arg0[%c14, %c0_84, %c0_85] : memref<16x2x25xf32, #tpu.memory_space<vmem>>, vector<1x2x25xf32>
    %86 = vector.shape_cast %85 : vector<1x2x25xf32> to vector<2x25xf32>
    %c14_86 = arith.constant 14 : index
    %c0_87 = arith.constant 0 : index
    %c0_88 = arith.constant 0 : index
    %87 = vector.load %arg1[%c14_86, %c0_87, %c0_88] : memref<16x25x128xf32, #tpu.memory_space<vmem>>, vector<1x25x128xf32>
    %88 = vector.shape_cast %87 : vector<1x25x128xf32> to vector<25x128xf32>
    %cst_89 = arith.constant dense<0.000000e+00> : vector<2x128xf32>
    %89 = tpu.matmul %86, %88, %cst_89 {dimension_numbers = #tpu.dot_dimension_numbers<[1], [0], [0], [1], [0, 0, 1, 1], [], []>} : vector<2x25xf32>, vector<25x128xf32>, vector<2x128xf32> -> vector<2x128xf32>
    %90 = arith.addf %84, %89 : vector<2x128xf32>
    %c15 = arith.constant 15 : index
    %c0_90 = arith.constant 0 : index
    %c0_91 = arith.constant 0 : index
    %91 = vector.load %arg0[%c15, %c0_90, %c0_91] : memref<16x2x25xf32, #tpu.memory_space<vmem>>, vector<1x2x25xf32>
    %92 = vector.shape_cast %91 : vector<1x2x25xf32> to vector<2x25xf32>
    %c15_92 = arith.constant 15 : index
    %c0_93 = arith.constant 0 : index
    %c0_94 = arith.constant 0 : index
    %93 = vector.load %arg1[%c15_92, %c0_93, %c0_94] : memref<16x25x128xf32, #tpu.memory_space<vmem>>, vector<1x25x128xf32>
    %94 = vector.shape_cast %93 : vector<1x25x128xf32> to vector<25x128xf32>
    %cst_95 = arith.constant dense<0.000000e+00> : vector<2x128xf32>
    %95 = tpu.matmul %92, %94, %cst_95 {dimension_numbers = #tpu.dot_dimension_numbers<[1], [0], [0], [1], [0, 0, 1, 1], [], []>} : vector<2x25xf32>, vector<25x128xf32>, vector<2x128xf32> -> vector<2x128xf32>
    %96 = arith.addf %90, %95 : vector<2x128xf32>
    %c0_96 = arith.constant 0 : index
    %c0_97 = arith.constant 0 : index
    %97 = vector.load %arg2[%c0_96, %c0_97] : memref<1x128xf32, #tpu.memory_space<vmem>>, vector<1x128xf32>
    %98 = vector.broadcast %97 : vector<1x128xf32> to vector<2x128xf32>
    %99 = arith.addf %96, %98 : vector<2x128xf32>
    %cst_98 = arith.constant 0.000000e+00 : f32
    %100 = vector.broadcast %cst_98 : f32 to vector<2x128xf32>
    %101 = arith.maximumf %99, %100 : vector<2x128xf32>
    %c0_99 = arith.constant 0 : index
    %c0_100 = arith.constant 0 : index
    %102 = vector.load %arg3[%c0_99, %c0_100] : memref<128x128xf32, #tpu.memory_space<vmem>>, vector<128x128xf32>
    %cst_101 = arith.constant dense<0.000000e+00> : vector<2x128xf32>
    %103 = tpu.matmul %101, %102, %cst_101 {dimension_numbers = #tpu.dot_dimension_numbers<[1], [0], [0], [1], [0, 0, 1, 1], [], []>} : vector<2x128xf32>, vector<128x128xf32>, vector<2x128xf32> -> vector<2x128xf32>
    %c0_102 = arith.constant 0 : index
    %c0_103 = arith.constant 0 : index
    %104 = vector.load %arg4[%c0_102, %c0_103] : memref<1x128xf32, #tpu.memory_space<vmem>>, vector<1x128xf32>
    %105 = vector.broadcast %104 : vector<1x128xf32> to vector<2x128xf32>
    %106 = arith.addf %103, %105 : vector<2x128xf32>
    %cst_104 = arith.constant 0.000000e+00 : f32
    %107 = vector.broadcast %cst_104 : f32 to vector<2x128xf32>
    %108 = arith.maximumf %106, %107 : vector<2x128xf32>
    %c0_105 = arith.constant 0 : index
    %c0_106 = arith.constant 0 : index
    %109 = vector.load %arg5[%c0_105, %c0_106] : memref<128x128xf32, #tpu.memory_space<vmem>>, vector<128x128xf32>
    %cst_107 = arith.constant dense<0.000000e+00> : vector<2x128xf32>
    %110 = tpu.matmul %108, %109, %cst_107 {dimension_numbers = #tpu.dot_dimension_numbers<[1], [0], [0], [1], [0, 0, 1, 1], [], []>} : vector<2x128xf32>, vector<128x128xf32>, vector<2x128xf32> -> vector<2x128xf32>
    %c0_108 = arith.constant 0 : index
    %c0_109 = arith.constant 0 : index
    %111 = vector.load %arg6[%c0_108, %c0_109] : memref<1x128xf32, #tpu.memory_space<vmem>>, vector<1x128xf32>
    %112 = vector.broadcast %111 : vector<1x128xf32> to vector<2x128xf32>
    %113 = arith.addf %110, %112 : vector<2x128xf32>
    %c0_110 = arith.constant 0 : index
    %c0_111 = arith.constant 0 : index
    %114 = vector.load %arg7[%c0_110, %c0_111] : memref<2x128xf32, #tpu.memory_space<vmem>>, vector<2x128xf32>
    tpu.vector_store %arg7[%c0_110, %c0_111], %113 {strides = array<i32>} : memref<2x128xf32, #tpu.memory_space<vmem>>, vector<2x128xf32>,
    return
  }
}

</mosaic_0001>

<bundles_post_ra>
// kernel: network_forward.3
= control target key start
LH: loop header
LB: loop body
LE: loop exit
PB: predicated region body
PF: predicated region fallthrough
CT: control target
= control target key end

     0   :  { %v1076_v3 = vmov 0.0   ;;  %v1077_v8 = vmov 0   ;;  %vm55_vm0 = vcmask 654336   ;;  %vm779_vm1 = vcmask 64512   ;;  %s1622_s0 = inlined_call_operand.vmem [shape: f32[4,80,392], index: 0, kind: input, shape index: {}]   ;;  %s1623_s1 = inlined_call_operand.vmem [shape: f32[8,80], index: 1, kind: input, shape index: {}]   ;;  %s1624_s2 = inlined_call_operand.vmem [shape: f32[8,1], index: 2, kind: input, shape index: {}]   ;;  %s1625_s3 = inlined_call_operand.vmem [shape: f32[8,392], index: 3, kind: output, shape index: {}]  }
   0x1   :  { %v16_v0 = vld [vmem:[%s1622_s0 + $0x8] sm:$0xff]  ;;  %v18_v2 = vld [vmem:[%s1622_s0 + $0x18] sm:$0xff]  ;;  %123 = vmatprep.mubr.f32.mxu0 %v1076_v3  ;;  %194 = vmatprep.mubr.f32.mxu1 %v1076_v3  ;;  %v15_v6 = vld [vmem:[%s1622_s0] sm:$0xff] }
   0x2   :  { %v20_v1 = vld [vmem:[%s1622_s0 + $0x28] sm:$0xff]  ;;  %v22_v5 = vld [vmem:[%s1622_s0 + $0x38] sm:$0xff]  ;;  %v19_v7 = vld [vmem:[%s1622_s0 + $0x20] sm:$0xff]  ;;  %1075 = vset.pattern.permute.xlu0 %v1077_v8 }
   0x3   :  { %v913_v4 = vpack.c.bf16 %v20_v1, %v16_v0  ;;  %v933_v9 = vpack.c.bf16 %v22_v5, %v18_v2  ;;  %v915_v10 = vpack.c.bf16 %v19_v7, %v15_v6  ;;  %v17_v11 = vld [vmem:[%s1622_s0 + $0x10] sm:$0xff]  ;;  %v24_v13 = vld [vmem:[%s1622_s0 + $0x48] sm:$0xff]  ;;  %v26_v16 = vld [vmem:[%s1622_s0 + $0x58] sm:$0xff] }
   0x4   :  { %v21_v12 = vld [vmem:[%s1622_s0 + $0x30] sm:$0xff]  ;;  %v28_v15 = vld [vmem:[%s1622_s0 + $0x68] sm:$0xff]  ;;  %v30_v17 = vld [vmem:[%s1622_s0 + $0x78] sm:$0xff] }
   0x5   :  { %914 = vmatprep.subr.bf16.mxu0 %v913_v4  ;;  %v935_v14 = vpack.c.bf16 %v21_v12, %v17_v11  ;;  %934 = vmatprep.subr.bf16.mxu1 %v933_v9  ;;  %v917_v18 = vpack.c.bf16 %v28_v15, %v24_v13  ;;  %v937_v19 = vpack.c.bf16 %v30_v17, %v26_v16  ;;  %v23_v20 = vld [vmem:[%s1622_s0 + $0x40] sm:$0xff]  ;;  %v25_v22 = vld [vmem:[%s1622_s0 + $0x50] sm:$0xff]  ;;  %v32_v25 = vld [vmem:[%s1622_s0 + $0x88] sm:$0xff] }
   0x6   :  { %916 = vmatpush1.bf16.msra.mxu0 %v915_v10  ;;  %v27_v21 = vld [vmem:[%s1622_s0 + $0x60] sm:$0xff]  ;;  %v29_v24 = vld [vmem:[%s1622_s0 + $0x70] sm:$0xff]  ;;  %v36_v26 = vld [vmem:[%s1622_s0 + $0xa8] sm:$0xff] }
   0x7   :  { %936 = vmatpush1.bf16.msra.mxu1 %v935_v14  ;;  %v919_v23 = vpack.c.bf16 %v27_v21, %v23_v20  ;;  %918 = vmatprep.subr.bf16.mxu0 %v917_v18  ;;  %v939_v27 = vpack.c.bf16 %v29_v24, %v25_v22  ;;  %v921_v28 = vpack.c.bf16 %v36_v26, %v32_v25  ;;  %v34_v29 = vld [vmem:[%s1622_s0 + $0x98] sm:$0xff]  ;;  %v31_v31 = vld [vmem:[%s1622_s0 + $0x80] sm:$0xff]  ;;  %v33_v34 = vld [vmem:[%s1622_s0 + $0x90] sm:$0xff] }
   0x8   :  { %938 = vmatprep.subr.bf16.mxu1 %v937_v19  ;;  %v38_v30 = vld [vmem:[%s1622_s0 + $0xb8] sm:$0xff]  ;;  %v35_v33 = vld [vmem:[%s1622_s0 + $0xa0] sm:$0xff]  ;;  %v37_v35 = vld [vmem:[%s1622_s0 + $0xb0] sm:$0xff] }
   0x9   :  { %v941_v32 = vpack.c.bf16 %v38_v30, %v34_v29  ;;  %v923_v36 = vpack.c.bf16 %v35_v33, %v31_v31  ;;  %v40_v37 = vld [vmem:[%s1622_s0 + $0xc8] sm:$0xff]  ;;  %v42_v39 = vld [vmem:[%s1622_s0 + $0xd8] sm:$0xff]  ;;  %v943_v40 = vpack.c.bf16 %v37_v35, %v33_v34  ;;  %v39_v43 = vld [vmem:[%s1622_s0 + $0xc0] sm:$0xff] }
   0xa   :  { %920 = vmatpush1.bf16.msra.mxu0 %v919_v23  ;;  %v44_v38 = vld [vmem:[%s1622_s0 + $0xe8] sm:$0xff]  ;;  %v46_v42 = vld [vmem:[%s1622_s0 + $0xf8] sm:$0xff]  ;;  %v43_v44 = vld [vmem:[%s1622_s0 + $0xe0] sm:$0xff] }
   0xb   :  { %940 = vmatpush1.bf16.msra.mxu1 %v939_v27  ;;  %922 = vmatprep.subr.bf16.mxu0 %v921_v28  ;;  %v925_v41 = vpack.c.bf16 %v44_v38, %v40_v37  ;;  %v945_v45 = vpack.c.bf16 %v46_v42, %v42_v39  ;;  %v41_v46 = vld [vmem:[%s1622_s0 + $0xd0] sm:$0xff]  ;;  %v48_v48 = vld [vmem:[%s1622_s0 + $0x108] sm:$0xff]  ;;  %v50_v50 = vld [vmem:[%s1622_s0 + $0x118] sm:$0xff]  ;;  %v927_v52 = vpack.c.bf16 %v43_v44, %v39_v43 }
   0xc   :  { %942 = vmatprep.subr.bf16.mxu1 %v941_v32  ;;  %v45_v47 = vld [vmem:[%s1622_s0 + $0xf0] sm:$0xff]  ;;  %v52_v49 = vld [vmem:[%s1622_s0 + $0x128] sm:$0xff]  ;;  %v54_v51 = vld [vmem:[%s1622_s0 + $0x138] sm:$0xff] }
   0xd   :  { %v947_v53 = vpack.c.bf16 %v45_v47, %v41_v46  ;;  %v929_v54 = vpack.c.bf16 %v52_v49, %v48_v48  ;;  %v47_v55 = vld [vmem:[%s1622_s0 + $0x100] sm:$0xff]  ;;  %v49_v57 = vld [vmem:[%s1622_s0 + $0x110] sm:$0xff]  ;;  %v949_v58 = vpack.c.bf16 %v54_v51, %v50_v50  ;;  %v788_v60 = vld [vmem:[%s1622_s0 + $0x148] sm:$0xff] }
   0xe   :  { %924 = vmatpush1.bf16.msra.mxu0 %v923_v36  ;;  %v51_v56 = vld [vmem:[%s1622_s0 + $0x120] sm:$0xff]  ;;  %v53_v59 = vld [vmem:[%s1622_s0 + $0x130] sm:$0xff]  ;;  %v792_v61 = vld [vmem:[%s1622_s0 + $0x168] sm:$0xff] }
   0xf   :  { %944 = vmatpush1.bf16.msra.mxu1 %v943_v40  ;;  %926 = vmatprep.subr.bf16.mxu0 %v925_v41  ;;  %v790_v62 = vld [vmem:[%s1622_s0 + $0x158] sm:$0xff]  ;;  %v931_v0 = vpack.c.bf16 %v51_v56, %v47_v55  ;;  %v951_v1 = vpack.c.bf16 %v53_v59, %v49_v57  ;;  %v953_v2 = vpack.c.bf16 %v792_v61, %v788_v60  ;;  %v787_v4 = vld [vmem:[%s1622_s0 + $0x140] sm:$0xff]  ;;  %v789_v6 = vld [vmem:[%s1622_s0 + $0x150] sm:$0xff] }
  0x10   :  { %946 = vmatprep.subr.bf16.mxu1 %v945_v45  ;;  %v794_v63 = vld [vmem:[%s1622_s0 + $0x178] sm:$0xff]  ;;  %v791_v5 = vld [vmem:[%s1622_s0 + $0x160] sm:$0xff]  ;;  %v793_v8 = vld [vmem:[%s1622_s0 + $0x170] sm:$0xff] }
  0x11   :  { %v973_v7 = vpack.c.bf16 %v794_v63, %v790_v62  ;;  %v796_v9 = vld [vmem:[%s1622_s0 + $0x188] sm:$0xff]  ;;  %v798_v11 = vld [vmem:[%s1622_s0 + $0x198] sm:$0xff]  ;;  %v1259_v13 = vld [vmem:[%s1623_s1] sm:$0xff]  ;;  %v955_v14 = vpack.c.bf16 %v791_v5, %v787_v4  ;;  %v975_v15 = vpack.c.bf16 %v793_v8, %v789_v6 }
  0x12   :  { %928 = vmatpush1.bf16.msra.mxu0 %v927_v52  ;;  %v800_v10 = vld [vmem:[%s1622_s0 + $0x1a8] sm:$0xff]  ;;  %v802_v12 = vld [vmem:[%s1622_s0 + $0x1b8] sm:$0xff]  ;;  %v795_v17 = vld [vmem:[%s1622_s0 + $0x180] sm:$0xff] }
  0x13   :  { %948 = vmatpush1.bf16.msra.mxu1 %v947_v53  ;;  %930 = vmatprep.subr.bf16.mxu0 %v929_v54  ;;  %v957_v16 = vpack.c.bf16 %v800_v10, %v796_v9  ;;  %v799_v18 = vld [vmem:[%s1622_s0 + $0x1a0] sm:$0xff]  ;;  %v797_v19 = vld [vmem:[%s1622_s0 + $0x190] sm:$0xff]  ;;  %v977_v20 = vpack.c.bf16 %v802_v12, %v798_v11  ;;  %v804_v22 = vld [vmem:[%s1622_s0 + $0x1c8] sm:$0xff] }
  0x14   :  { %950 = vmatprep.subr.bf16.mxu1 %v949_v58  ;;  %v801_v21 = vld [vmem:[%s1622_s0 + $0x1b0] sm:$0xff]  ;;  %v808_v23 = vld [vmem:[%s1622_s0 + $0x1e8] sm:$0xff]  ;;  %v806_v24 = vld [vmem:[%s1622_s0 + $0x1d8] sm:$0xff]  ;;  %v959_v26 = vpack.c.bf16 %v799_v18, %v795_v17 }
  0x15   :  { %v810_v25 = vld [vmem:[%s1622_s0 + $0x1f8] sm:$0xff]  ;;  %v979_v27 = vpack.c.bf16 %v801_v21, %v797_v19  ;;  %v961_v28 = vpack.c.bf16 %v808_v23, %v804_v22  ;;  %v803_v29 = vld [vmem:[%s1622_s0 + $0x1c0] sm:$0xff]  ;;  %v805_v31 = vld [vmem:[%s1622_s0 + $0x1d0] sm:$0xff] }
  0x16   :  { %932 = vmatpush1.bf16.msra.mxu0 %v931_v0  ;;  %v807_v30 = vld [vmem:[%s1622_s0 + $0x1e0] sm:$0xff]  ;;  %v981_v32 = vpack.c.bf16 %v810_v25, %v806_v24  ;;  %v809_v33 = vld [vmem:[%s1622_s0 + $0x1f0] sm:$0xff]  ;;  %v812_v34 = vld [vmem:[%s1622_s0 + $0x208] sm:$0xff] }
  0x17   :  { %952 = vmatpush1.bf16.msra.mxu1 %v951_v1  ;;  %954 = vmatprep.subr.bf16.mxu0 %v953_v2  ;;  %v816_v35 = vld [vmem:[%s1622_s0 + $0x228] sm:$0xff]  ;;  %v814_v36 = vld [vmem:[%s1622_s0 + $0x218] sm:$0xff]  ;;  %v963_v38 = vpack.c.bf16 %v807_v30, %v803_v29  ;;  %v983_v39 = vpack.c.bf16 %v809_v33, %v805_v31  ;;  %v811_v41 = vld [vmem:[%s1622_s0 + $0x200] sm:$0xff] }
  0x18   :  { %974 = vmatprep.subr.bf16.mxu1 %v973_v7  ;;  %v818_v37 = vld [vmem:[%s1622_s0 + $0x238] sm:$0xff]  ;;  %v965_v40 = vpack.c.bf16 %v816_v35, %v812_v34  ;;  %v815_v42 = vld [vmem:[%s1622_s0 + $0x220] sm:$0xff]  ;;  %v813_v43 = vld [vmem:[%s1622_s0 + $0x210] sm:$0xff] }
  0x19   :  { %785 = vmatmul.mubr.msk.f32.vlgmr.msra.gmra.mrb[0].mxu0 %vm55_vm0, %v1259_v13  ;;  %v985_v44 = vpack.c.bf16 %v818_v37, %v814_v36  ;;  %v817_v45 = vld [vmem:[%s1622_s0 + $0x230] sm:$0xff]  ;;  %v820_v46 = vld [vmem:[%s1622_s0 + $0x248] sm:$0xff]  ;;  %v822_v48 = vld [vmem:[%s1622_s0 + $0x258] sm:$0xff]  ;;  %v967_v50 = vpack.c.bf16 %v815_v42, %v811_v41 }
  0x1a   :  { %786 = vmatmul.mubr.msk.f32.vlgmr.msra.gmra.mrb[0].mxu1 %vm55_vm0, %v1259_v13  ;;  %956 = vmatpush1.bf16.msra.mxu0 %v955_v14  ;;  %v824_v47 = vld [vmem:[%s1622_s0 + $0x268] sm:$0xff]  ;;  %v826_v49 = vld [vmem:[%s1622_s0 + $0x278] sm:$0xff]  ;;  %v987_v51 = vpack.c.bf16 %v817_v45, %v813_v43  ;;  %v819_v53 = vld [vmem:[%s1622_s0 + $0x240] sm:$0xff] }
  0x1b   :  { %976 = vmatpush1.bf16.msra.mxu1 %v975_v15  ;;  %958 = vmatprep.subr.bf16.mxu0 %v957_v16  ;;  %v969_v52 = vpack.c.bf16 %v824_v47, %v820_v46  ;;  %v823_v54 = vld [vmem:[%s1622_s0 + $0x260] sm:$0xff]  ;;  %v821_v55 = vld [vmem:[%s1622_s0 + $0x250] sm:$0xff]  ;;  %v989_v56 = vpack.c.bf16 %v826_v49, %v822_v48  ;;  %v830_v58 = vld [vmem:[%s1622_s0 + $0x288] sm:$0xff] }
  0x1c   :  { %978 = vmatprep.subr.bf16.mxu1 %v977_v20  ;;  %306 = vmatprep.mubr.f32.mxu0 %v1076_v3  ;;  %v825_v57 = vld [vmem:[%s1622_s0 + $0x270] sm:$0xff]  ;;  %v834_v59 = vld [vmem:[%s1622_s0 + $0x2a8] sm:$0xff]  ;;  %v832_v60 = vld [vmem:[%s1622_s0 + $0x298] sm:$0xff]  ;;  %v971_v62 = vpack.c.bf16 %v823_v54, %v819_v53 }
  0x1d   :  { %377 = vmatprep.mubr.f32.mxu1 %v1076_v3  ;;  %v836_v61 = vld [vmem:[%s1622_s0 + $0x2b8] sm:$0xff]  ;;  %v991_v63 = vpack.c.bf16 %v825_v57, %v821_v55  ;;  %v993_v0 = vpack.c.bf16 %v834_v59, %v830_v58  ;;  %v829_v1 = vld [vmem:[%s1622_s0 + $0x280] sm:$0xff]  ;;  %v831_v4 = vld [vmem:[%s1622_s0 + $0x290] sm:$0xff] }
  0x1e   :  { %960 = vmatpush1.bf16.msra.mxu0 %v959_v26  ;;  %v833_v2 = vld [vmem:[%s1622_s0 + $0x2a0] sm:$0xff]  ;;  %v1013_v5 = vpack.c.bf16 %v836_v61, %v832_v60  ;;  %v835_v6 = vld [vmem:[%s1622_s0 + $0x2b0] sm:$0xff]  ;;  %v838_v7 = vld [vmem:[%s1622_s0 + $0x2c8] sm:$0xff] }
  0x1f   :  { %980 = vmatpush1.bf16.msra.mxu1 %v979_v27  ;;  %962 = vmatprep.subr.bf16.mxu0 %v961_v28  ;;  %v842_v8 = vld [vmem:[%s1622_s0 + $0x2e8] sm:$0xff]  ;;  %v840_v9 = vld [vmem:[%s1622_s0 + $0x2d8] sm:$0xff]  ;;  %v995_v11 = vpack.c.bf16 %v833_v2, %v829_v1  ;;  %v1015_v12 = vpack.c.bf16 %v835_v6, %v831_v4  ;;  %v837_v15 = vld [vmem:[%s1622_s0 + $0x2c0] sm:$0xff] }
  0x20   :  { %982 = vmatprep.subr.bf16.mxu1 %v981_v32  ;;  %v844_v10 = vld [vmem:[%s1622_s0 + $0x2f8] sm:$0xff]  ;;  %v997_v14 = vpack.c.bf16 %v842_v8, %v838_v7  ;;  %v841_v16 = vld [vmem:[%s1622_s0 + $0x2e0] sm:$0xff]  ;;  %v839_v17 = vld [vmem:[%s1622_s0 + $0x2d0] sm:$0xff] }
  0x21   :  { %v1017_v18 = vpack.c.bf16 %v844_v10, %v840_v9  ;;  %v843_v19 = vld [vmem:[%s1622_s0 + $0x2f0] sm:$0xff]  ;;  %v846_v20 = vld [vmem:[%s1622_s0 + $0x308] sm:$0xff]  ;;  %v848_v22 = vld [vmem:[%s1622_s0 + $0x318] sm:$0xff]  ;;  %v999_v24 = vpack.c.bf16 %v841_v16, %v837_v15 }
  0x22   :  { %964 = vmatpush1.bf16.msra.mxu0 %v963_v38  ;;  %v850_v21 = vld [vmem:[%s1622_s0 + $0x328] sm:$0xff]  ;;  %v852_v23 = vld [vmem:[%s1622_s0 + $0x338] sm:$0xff]  ;;  %v1019_v25 = vpack.c.bf16 %v843_v19, %v839_v17  ;;  %v845_v27 = vld [vmem:[%s1622_s0 + $0x300] sm:$0xff] }
  0x23   :  { %984 = vmatpush1.bf16.msra.mxu1 %v983_v39  ;;  %966 = vmatprep.subr.bf16.mxu0 %v965_v40  ;;  %v1001_v26 = vpack.c.bf16 %v850_v21, %v846_v20  ;;  %v849_v28 = vld [vmem:[%s1622_s0 + $0x320] sm:$0xff]  ;;  %v847_v29 = vld [vmem:[%s1622_s0 + $0x310] sm:$0xff]  ;;  %v1021_v30 = vpack.c.bf16 %v852_v23, %v848_v22  ;;  %v854_v32 = vld [vmem:[%s1622_s0 + $0x348] sm:$0xff] }
  0x24   :  { %986 = vmatprep.subr.bf16.mxu1 %v985_v44  ;;  %v851_v31 = vld [vmem:[%s1622_s0 + $0x330] sm:$0xff]  ;;  %v858_v33 = vld [vmem:[%s1622_s0 + $0x368] sm:$0xff]  ;;  %v856_v34 = vld [vmem:[%s1622_s0 + $0x358] sm:$0xff]  ;;  %v1003_v36 = vpack.c.bf16 %v849_v28, %v845_v27 }
  0x25   :  { %v860_v35 = vld [vmem:[%s1622_s0 + $0x378] sm:$0xff]  ;;  %v1023_v37 = vpack.c.bf16 %v851_v31, %v847_v29  ;;  %v1005_v38 = vpack.c.bf16 %v858_v33, %v854_v32  ;;  %v853_v39 = vld [vmem:[%s1622_s0 + $0x340] sm:$0xff]  ;;  %v855_v41 = vld [vmem:[%s1622_s0 + $0x350] sm:$0xff] }
  0x26   :  { %968 = vmatpush1.bf16.msra.mxu0 %v967_v50  ;;  %v857_v40 = vld [vmem:[%s1622_s0 + $0x360] sm:$0xff]  ;;  %v1025_v42 = vpack.c.bf16 %v860_v35, %v856_v34  ;;  %v859_v43 = vld [vmem:[%s1622_s0 + $0x370] sm:$0xff]  ;;  %v862_v44 = vld [vmem:[%s1622_s0 + $0x388] sm:$0xff] }
  0x27   :  { %988 = vmatpush1.bf16.msra.mxu1 %v987_v51  ;;  %970 = vmatprep.subr.bf16.mxu0 %v969_v52  ;;  %v866_v45 = vld [vmem:[%s1622_s0 + $0x3a8] sm:$0xff]  ;;  %v864_v46 = vld [vmem:[%s1622_s0 + $0x398] sm:$0xff]  ;;  %v1007_v48 = vpack.c.bf16 %v857_v40, %v853_v39  ;;  %v861_v49 = vld [vmem:[%s1622_s0 + $0x380] sm:$0xff]  ;;  %v1027_v50 = vpack.c.bf16 %v859_v43, %v855_v41 }
  0x28   :  { %990 = vmatprep.subr.bf16.mxu1 %v989_v56  ;;  %v868_v47 = vld [vmem:[%s1622_s0 + $0x3b8] sm:$0xff]  ;;  %v1009_v51 = vpack.c.bf16 %v866_v45, %v862_v44  ;;  %v865_v52 = vld [vmem:[%s1622_s0 + $0x3a0] sm:$0xff]  ;;  %v863_v53 = vld [vmem:[%s1622_s0 + $0x390] sm:$0xff] }
  0x29   :  { %v762_v54 = vld [vmem:[%s1624_s2] sm:$0xff]  ;;  %v1029_v55 = vpack.c.bf16 %v868_v47, %v864_v46  ;;  %v867_v56 = vld [vmem:[%s1622_s0 + $0x3b0] sm:$0xff]  ;;  %v872_v57 = vld [vmem:[%s1622_s0 + $0x3c8] sm:$0xff]  ;;  %v1011_v61 = vpack.c.bf16 %v865_v52, %v861_v49 }
  0x2a   :  { %972 = vmatpush1.bf16.msra.mxu0 %v971_v62  ;;  %v876_v58 = vld [vmem:[%s1622_s0 + $0x3e8] sm:$0xff]  ;;  %765 = vperm.xlu0 %1075, %v762_v54   ;;  %v874_v59 = vld [vmem:[%s1622_s0 + $0x3d8] sm:$0xff]  ;;  %v1031_v62 = vpack.c.bf16 %v867_v56, %v863_v53  ;;  %v875_v1 = vld [vmem:[%s1622_s0 + $0x3e0] sm:$0xff] }
  0x2b   :  { %992 = vmatpush1.bf16.msra.mxu1 %v991_v63  ;;  %994 = vmatprep.subr.bf16.mxu0 %v993_v0  ;;  %v878_v60 = vld [vmem:[%s1622_s0 + $0x3f8] sm:$0xff]  ;;  %v1033_v63 = vpack.c.bf16 %v876_v58, %v872_v57  ;;  %v871_v0 = vld [vmem:[%s1622_s0 + $0x3c0] sm:$0xff]  ;;  %v873_v2 = vld [vmem:[%s1622_s0 + $0x3d0] sm:$0xff] }
  0x2c   :  { %1014 = vmatprep.subr.bf16.mxu1 %v1013_v5  ;;  %v1053_v4 = vpack.c.bf16 %v878_v60, %v874_v59  ;;  %v877_v5 = vld [vmem:[%s1622_s0 + $0x3f0] sm:$0xff]  ;;  %v880_v6 = vld [vmem:[%s1622_s0 + $0x408] sm:$0xff]  ;;  %v882_v8 = vld [vmem:[%s1622_s0 + $0x418] sm:$0xff]  ;;  %v1035_v10 = vpack.c.bf16 %v875_v1, %v871_v0 }
  0x2d   :  { %827 = vmatmul.mubr.msk.f32.vlgmr.msra.gmra.mrb[2].mxu0 %vm55_vm0, %v1259_v13  ;;  %v884_v7 = vld [vmem:[%s1622_s0 + $0x428] sm:$0xff]  ;;  %v886_v9 = vld [vmem:[%s1622_s0 + $0x438] sm:$0xff]  ;;  %v883_v15 = vld [vmem:[%s1622_s0 + $0x420] sm:$0xff] }
  0x2e   :  { %828 = vmatmul.mubr.msk.f32.vlgmr.msra.gmra.mrb[2].mxu1 %vm55_vm0, %v1259_v13  ;;  %996 = vmatpush1.bf16.msra.mxu0 %v995_v11  ;;  %v1055_v11 = vpack.c.bf16 %v877_v5, %v873_v2  ;;  %v881_v16 = vld [vmem:[%s1622_s0 + $0x410] sm:$0xff]  ;;  %v1057_v17 = vpack.c.bf16 %v886_v9, %v882_v8  ;;  %v888_v19 = vld [vmem:[%s1622_s0 + $0x448] sm:$0xff]  ;;  %v890_v21 = vld [vmem:[%s1622_s0 + $0x458] sm:$0xff] }
  0x2f   :  { %1016 = vmatpush1.bf16.msra.mxu1 %v1015_v12  ;;  %998 = vmatprep.subr.bf16.mxu0 %v997_v14  ;;  %v1037_v12 = vpack.c.bf16 %v884_v7, %v880_v6  ;;  %v879_v14 = vld [vmem:[%s1622_s0 + $0x400] sm:$0xff]  ;;  %v892_v20 = vld [vmem:[%s1622_s0 + $0x468] sm:$0xff]  ;;  %v894_v22 = vld [vmem:[%s1622_s0 + $0x478] sm:$0xff] }
  0x30   :  { %1018 = vmatprep.subr.bf16.mxu1 %v1017_v18  ;;  %493 = vmatprep.mubr.f32.mxu0 %v1076_v3  ;;  %v885_v18 = vld [vmem:[%s1622_s0 + $0x430] sm:$0xff]  ;;  %v1039_v23 = vpack.c.bf16 %v883_v15, %v879_v14  ;;  %v891_v27 = vld [vmem:[%s1622_s0 + $0x460] sm:$0xff]  ;;  %v1061_v29 = vpack.c.bf16 %v894_v22, %v890_v21  ;;  %v896_v31 = vld [vmem:[%s1622_s0 + $0x488] sm:$0xff] }
  0x31   :  { %564 = vmatprep.mubr.f32.mxu1 %v1076_v3  ;;  %v889_v28 = vld [vmem:[%s1622_s0 + $0x450] sm:$0xff]  ;;  %v900_v32 = vld [vmem:[%s1622_s0 + $0x4a8] sm:$0xff]  ;;  %v898_v33 = vld [vmem:[%s1622_s0 + $0x498] sm:$0xff] }
  0x32   :  { %1000 = vmatpush1.bf16.msra.mxu0 %v999_v24  ;;  %v1059_v24 = vpack.c.bf16 %v885_v18, %v881_v16  ;;  %v902_v34 = vld [vmem:[%s1622_s0 + $0x4b8] sm:$0xff]  ;;  %v899_v39 = vld [vmem:[%s1622_s0 + $0x4a0] sm:$0xff]  ;;  %v897_v40 = vld [vmem:[%s1622_s0 + $0x490] sm:$0xff] }
  0x33   :  { %1020 = vmatpush1.bf16.msra.mxu1 %v1019_v25  ;;  %1002 = vmatprep.subr.bf16.mxu0 %v1001_v26  ;;  %v1041_v25 = vpack.c.bf16 %v892_v20, %v888_v19  ;;  %v887_v26 = vld [vmem:[%s1622_s0 + $0x440] sm:$0xff]  ;;  %v901_v41 = vld [vmem:[%s1622_s0 + $0x4b0] sm:$0xff]  ;;  %v908_v43 = vld [vmem:[%s1622_s0 + $0x4e8] sm:$0xff] }
  0x34   :  { %1022 = vmatprep.subr.bf16.mxu1 %v1021_v30  ;;  %v893_v30 = vld [vmem:[%s1622_s0 + $0x470] sm:$0xff]  ;;  %v1043_v35 = vpack.c.bf16 %v891_v27, %v887_v26  ;;  %v906_v44 = vld [vmem:[%s1622_s0 + $0x4d8] sm:$0xff]  ;;  %v1067_v47 = vpack.c.bf16 %v901_v41, %v897_v40  ;;  %v903_v49 = vld [vmem:[%s1622_s0 + $0x4c0] sm:$0xff] }
  0x35   :  { %v910_v45 = vld [vmem:[%s1622_s0 + $0x4f8] sm:$0xff]  ;;  %v905_v52 = vld [vmem:[%s1622_s0 + $0x4d0] sm:$0xff] }
  0x36   :  { %1004 = vmatpush1.bf16.msra.mxu0 %v1003_v36  ;;  %v1063_v36 = vpack.c.bf16 %v893_v30, %v889_v28  ;;  %v909_v53 = vld [vmem:[%s1622_s0 + $0x4f0] sm:$0xff] }
  0x37   :  { %1024 = vmatpush1.bf16.msra.mxu1 %v1023_v37  ;;  %1006 = vmatprep.subr.bf16.mxu0 %v1005_v38  ;;  %v1045_v37 = vpack.c.bf16 %v900_v32, %v896_v31  ;;  %v895_v38 = vld [vmem:[%s1622_s0 + $0x480] sm:$0xff] }
  0x38   :  { %1026 = vmatprep.subr.bf16.mxu1 %v1025_v42  ;;  %v904_v42 = vld [vmem:[%s1622_s0 + $0x4c8] sm:$0xff]  ;;  %v1047_v46 = vpack.c.bf16 %v899_v39, %v895_v38 }
  0x3a   :  { %1008 = vmatpush1.bf16.msra.mxu0 %v1007_v48  ;;  %v1049_v48 = vpack.c.bf16 %v908_v43, %v904_v42 }
  0x3b   :  { %1028 = vmatpush1.bf16.msra.mxu1 %v1027_v50  ;;  %1010 = vmatprep.subr.bf16.mxu0 %v1009_v51  ;;  %v907_v50 = vld [vmem:[%s1622_s0 + $0x4e0] sm:$0xff]  ;;  %v1069_v51 = vpack.c.bf16 %v910_v45, %v906_v44 }
  0x3c   :  { %1030 = vmatprep.subr.bf16.mxu1 %v1029_v55  ;;  %v1051_v54 = vpack.c.bf16 %v907_v50, %v903_v49  ;;  %v1071_v55 = vpack.c.bf16 %v909_v53, %v905_v52 }
  0x3e   :  { %1012 = vmatpush1.bf16.msra.mxu0 %v1011_v61 }
  0x3f   :  { %1032 = vmatpush1.bf16.msra.mxu1 %v1031_v62  ;;  %1034 = vmatprep.subr.bf16.mxu0 %v1033_v63 }
  0x40   :  { %1054 = vmatprep.subr.bf16.mxu1 %v1053_v4 }
  0x41   :  { %869 = vmatmul.mubr.msk.f32.vlgmr.msra.gmra.mrb[4].mxu0 %vm55_vm0, %v1259_v13 }
  0x42   :  { %870 = vmatmul.mubr.msk.f32.vlgmr.msra.gmra.mrb[4].mxu1 %vm55_vm0, %v1259_v13  ;;  %1036 = vmatpush1.bf16.msra.mxu0 %v1035_v10 }
  0x43   :  { %1056 = vmatpush1.bf16.msra.mxu1 %v1055_v11  ;;  %1038 = vmatprep.subr.bf16.mxu0 %v1037_v12 }
  0x44   :  { %1058 = vmatprep.subr.bf16.mxu1 %v1057_v17  ;;  %680 = vmatprep.mubr.f32.mxu0 %v1076_v3 }
  0x45   :  { %751 = vmatprep.mubr.f32.mxu1 %v1076_v3  ;;  %v1065_v3 = vpack.c.bf16 %v902_v34, %v898_v33 }
  0x46   :  { %1040 = vmatpush1.bf16.msra.mxu0 %v1039_v23 }
  0x47   :  { %1060 = vmatpush1.bf16.msra.mxu1 %v1059_v24  ;;  %1042 = vmatprep.subr.bf16.mxu0 %v1041_v25 }
  0x48   :  { %1062 = vmatprep.subr.bf16.mxu1 %v1061_v29 }
  0x4a   :  { %1044 = vmatpush1.bf16.msra.mxu0 %v1043_v35 }
  0x4b   :  { %1064 = vmatpush1.bf16.msra.mxu1 %v1063_v36  ;;  %1046 = vmatprep.subr.bf16.mxu0 %v1045_v37 }
  0x4c   :  { %1066 = vmatprep.subr.bf16.mxu1 %v1065_v3 }
  0x4e   :  { %1048 = vmatpush1.bf16.msra.mxu0 %v1047_v46 }
  0x4f   :  { %1068 = vmatpush1.bf16.msra.mxu1 %v1067_v47  ;;  %1050 = vmatprep.subr.bf16.mxu0 %v1049_v48 }
  0x50   :  { %1070 = vmatprep.subr.bf16.mxu1 %v1069_v51 }
  0x52   :  { %1052 = vmatpush1.bf16.msra.mxu0 %v1051_v54 }
  0x53   :  { %1072 = vmatpush1.bf16.msra.mxu1 %v1071_v55 }
  0x55   :  { %911 = vmatmul.mubr.msk.f32.vlgmr.msra.gmra.mrb[6].mxu0 %vm55_vm0, %v1259_v13 }
  0x56   :  { %912 = vmatmul.mubr.msk.f32.vlgmr.msra.gmra.mrb[6].mxu1 %vm55_vm0, %v1259_v13 }
  0xa9   :  { %v766_v14 = vpop.permute.xlu0 %765 }
  0xec   :  { %v125_v56 = vpop.f32.mrb[0].mxu0 }
  0xed   :  { %v196_v57 = vpop.f32.mrb[0].mxu1  ;;  %v127_v58 = vpop.f32.mrb[1].mxu0 }
  0xee   :  { %v198_v59 = vpop.f32.mrb[1].mxu1 }
 0x100   :  { %v308_v60 = vpop.f32.mrb[2].mxu0 }
 0x101   :  { %v384_v61 = vmax.f32 %v125_v56, %v308_v60  ;;  %v379_v62 = vpop.f32.mrb[2].mxu1  ;;  %v310_v63 = vpop.f32.mrb[3].mxu0 }
 0x102   :  { %v386_v0 = vmax.f32 %v196_v57, %v379_v62  ;;  %v385_v1 = vmax.f32 %v127_v58, %v310_v63  ;;  %v381_v2 = vpop.f32.mrb[3].mxu1 }
 0x103   :  { %v387_v4 = vmax.f32 %v198_v59, %v381_v2 }
 0x114   :  { %v495_v5 = vpop.f32.mrb[4].mxu0 }
 0x115   :  { %v571_v6 = vmax.f32 %v384_v61, %v495_v5  ;;  %v566_v7 = vpop.f32.mrb[4].mxu1  ;;  %v497_v8 = vpop.f32.mrb[5].mxu0 }
 0x116   :  { %v573_v9 = vmax.f32 %v386_v0, %v566_v7  ;;  %v572_v10 = vmax.f32 %v385_v1, %v497_v8  ;;  %v568_v11 = vpop.f32.mrb[5].mxu1 }
 0x117   :  { %v574_v13 = vmax.f32 %v387_v4, %v568_v11 }
 0x128   :  { %v682_v12 = vpop.f32.mrb[6].mxu0 }
 0x129   :  { %v758_v15 = vmax.f32 %v571_v6, %v682_v12  ;;  %v753_v16 = vpop.f32.mrb[6].mxu1  ;;  %v684_v17 = vpop.f32.mrb[7].mxu0 }
 0x12a   :  { %v760_v18 = vmax.f32 %v573_v9, %v753_v16  ;;  %v759_v19 = vmax.f32 %v572_v10, %v684_v17  ;;  %v755_v20 = vpop.f32.mrb[7].mxu1 }
 0x12b   :  { %v761_v21 = vmax.f32 %v574_v13, %v755_v20  ;;  %v768_v22 = vadd.f32 %v766_v14, %v758_v15 }
 0x12c   :  { %v769_v23 = vadd.f32 %v766_v14, %v759_v19  ;;  %v770_v24 = vadd.f32 %v766_v14, %v760_v18 }
 0x12d   :  { %v771_v25 = vadd.f32 %v766_v14, %v761_v21  ;;  %v772_v26 = vmax.f32 %v768_v22, 0.0 }
 0x12e   :  { %v773_v27 = vmax.f32 %v769_v23, 0.0  ;;  %v774_v28 = vmax.f32 %v770_v24, 0.0 }
 0x12f   :  { %v775_v29 = vmax.f32 %v771_v25, 0.0  ;;  %776 = vst [vmem:[%s1625_s3] sm:$0xff] %v772_v26 }
 0x130   :  { %777 = vst [vmem:[%s1625_s3 + $0x8] sm:$0xff] %v773_v27  ;;  %778 = vst [vmem:[%s1625_s3 + $0x10] sm:$0xff] %v774_v28 }
 0x131   :  { %780 = vst.msk [vmem:[%s1625_s3 + $0x18] sm:$0xff] %vm779_vm1, %v775_v29 }

// kernel: network_forward.4
= control target key start
LH: loop header
LB: loop body
LE: loop exit
PB: predicated region body
PF: predicated region fallthrough
CT: control target
= control target key end

     0   :  { %v688_v0 = vmov 0.0|0.0   ;;  %v689_v8 = vmov 0   ;;  %vm43_vm0 = vcmask 588800   ;;  %vm450_vm1 = vcmask 408576   ;;  %s1119_s0 = inlined_call_operand.vmem [shape: f32[4,200,50], index: 0, kind: input, shape index: {}]   ;;  %s1120_s1 = inlined_call_operand.vmem [shape: f32[16,200], index: 1, kind: input, shape index: {}]   ;;  %s1121_s2 = inlined_call_operand.vmem [shape: f32[16,1], index: 2, kind: input, shape index: {}]   ;;  %s1122_s3 = inlined_call_operand.vmem [shape: f32[16,50], index: 3, kind: output, shape index: {}]  }
   0x1   :  { %540 = vmatprep.subr.bf16.mxu0 %v688_v0  ;;  %v18_v1 = vld [vmem:[%s1119_s0] sm:$0xff]  ;;  %v19_v2 = vld [vmem:[%s1119_s0 + $0x8] sm:$0xff]  ;;  %576 = vmatprep.subr.bf16.mxu1 %v688_v0  ;;  %v460_v5 = vld [vmem:[%s1119_s0 + $0xd0] sm:$0xff] }
   0x2   :  { %v459_v3 = vld [vmem:[%s1119_s0 + $0xc8] sm:$0xff]  ;;  %v541_v4 = vpack.c.bf16 %v19_v2, %v18_v1  ;;  %v20_v6 = vld [vmem:[%s1119_s0 + $0x10] sm:$0xff]  ;;  %v21_v7 = vld [vmem:[%s1119_s0 + $0x18] sm:$0xff]  ;;  %687 = vset.pattern.permute.xlu0 %v689_v8 }
   0x3   :  { %v577_v9 = vpack.c.bf16 %v460_v5, %v459_v3  ;;  %v461_v10 = vld [vmem:[%s1119_s0 + $0xd8] sm:$0xff]  ;;  %v462_v11 = vld [vmem:[%s1119_s0 + $0xe0] sm:$0xff]  ;;  %v544_v12 = vpack.c.bf16 %v21_v7, %v20_v6  ;;  %v23_v15 = vld [vmem:[%s1119_s0 + $0x28] sm:$0xff] }
   0x4   :  { %542 = vmatpush1.bf16.msra.mxu0 %v541_v4  ;;  %v580_v13 = vpack.c.bf16 %v462_v11, %v461_v10  ;;  %v22_v14 = vld [vmem:[%s1119_s0 + $0x20] sm:$0xff]  ;;  %v463_v16 = vld [vmem:[%s1119_s0 + $0xe8] sm:$0xff]  ;;  %v464_v17 = vld [vmem:[%s1119_s0 + $0xf0] sm:$0xff] }
   0x5   :  { %578 = vmatpush1.bf16.msra.mxu1 %v577_v9  ;;  %543 = vmatprep.subr.bf16.mxu0 %v688_v0  ;;  %v547_v18 = vpack.c.bf16 %v23_v15, %v22_v14  ;;  %v583_v19 = vpack.c.bf16 %v464_v17, %v463_v16  ;;  %v24_v20 = vld [vmem:[%s1119_s0 + $0x30] sm:$0xff]  ;;  %v25_v21 = vld [vmem:[%s1119_s0 + $0x38] sm:$0xff]  ;;  %v466_v23 = vld [vmem:[%s1119_s0 + $0x100] sm:$0xff]  ;;  %v690_v16 = vmov 0.0  }
   0x6   :  { %579 = vmatprep.subr.bf16.mxu1 %v688_v0  ;;  %v465_v22 = vld [vmem:[%s1119_s0 + $0xf8] sm:$0xff]  ;;  %v550_v24 = vpack.c.bf16 %v25_v21, %v24_v20  ;;  %v26_v26 = vld [vmem:[%s1119_s0 + $0x40] sm:$0xff]  ;;  %v27_v27 = vld [vmem:[%s1119_s0 + $0x48] sm:$0xff] }
   0x7   :  { %v586_v25 = vpack.c.bf16 %v466_v23, %v465_v22  ;;  %v467_v28 = vld [vmem:[%s1119_s0 + $0x108] sm:$0xff]  ;;  %v468_v29 = vld [vmem:[%s1119_s0 + $0x110] sm:$0xff]  ;;  %v553_v30 = vpack.c.bf16 %v27_v27, %v26_v26  ;;  %v29_v33 = vld [vmem:[%s1119_s0 + $0x58] sm:$0xff] }
   0x8   :  { %545 = vmatpush1.bf16.msra.mxu0 %v544_v12  ;;  %v589_v31 = vpack.c.bf16 %v468_v29, %v467_v28  ;;  %v28_v32 = vld [vmem:[%s1119_s0 + $0x50] sm:$0xff]  ;;  %v789_v34 = vld [vmem:[%s1120_s1 + $0x8] sm:$0xff]  ;;  %v469_v35 = vld [vmem:[%s1119_s0 + $0x118] sm:$0xff] }
   0x9   :  { %581 = vmatpush1.bf16.msra.mxu1 %v580_v13  ;;  %546 = vmatprep.subr.bf16.mxu0 %v688_v0  ;;  %v470_v36 = vld [vmem:[%s1119_s0 + $0x120] sm:$0xff]  ;;  %v556_v37 = vpack.c.bf16 %v29_v33, %v28_v32  ;;  %v31_v40 = vld [vmem:[%s1119_s0 + $0x68] sm:$0xff]  ;;  %v472_v42 = vld [vmem:[%s1119_s0 + $0x130] sm:$0xff] }
   0xa   :  { %582 = vmatprep.subr.bf16.mxu1 %v688_v0  ;;  %457 = vmatprep.mubr.msk.f32.mxu0 %vm43_vm0, %v789_v34  ;;  %v592_v38 = vpack.c.bf16 %v470_v36, %v469_v35  ;;  %v30_v39 = vld [vmem:[%s1119_s0 + $0x60] sm:$0xff]  ;;  %v471_v41 = vld [vmem:[%s1119_s0 + $0x128] sm:$0xff]  ;;  %v32_v45 = vld [vmem:[%s1119_s0 + $0x70] sm:$0xff] }
   0xb   :  { %484 = vmatprep.mubr.msk.f32.mxu1 %vm43_vm0, %v789_v34  ;;  %v559_v43 = vpack.c.bf16 %v31_v40, %v30_v39  ;;  %v595_v44 = vpack.c.bf16 %v472_v42, %v471_v41  ;;  %v33_v46 = vld [vmem:[%s1119_s0 + $0x78] sm:$0xff]  ;;  %v474_v48 = vld [vmem:[%s1119_s0 + $0x140] sm:$0xff]  ;;  %v35_v52 = vld [vmem:[%s1119_s0 + $0x88] sm:$0xff] }
   0xc   :  { %548 = vmatpush1.bf16.msra.mxu0 %v547_v18  ;;  %v473_v47 = vld [vmem:[%s1119_s0 + $0x138] sm:$0xff]  ;;  %v562_v49 = vpack.c.bf16 %v33_v46, %v32_v45  ;;  %v34_v51 = vld [vmem:[%s1119_s0 + $0x80] sm:$0xff]  ;;  %v475_v53 = vld [vmem:[%s1119_s0 + $0x148] sm:$0xff] }
   0xd   :  { %584 = vmatpush1.bf16.msra.mxu1 %v583_v19  ;;  %549 = vmatprep.subr.bf16.mxu0 %v688_v0  ;;  %v598_v50 = vpack.c.bf16 %v474_v48, %v473_v47  ;;  %v476_v54 = vld [vmem:[%s1119_s0 + $0x150] sm:$0xff]  ;;  %v565_v55 = vpack.c.bf16 %v35_v52, %v34_v51  ;;  %v37_v58 = vld [vmem:[%s1119_s0 + $0x98] sm:$0xff]  ;;  %v478_v60 = vld [vmem:[%s1119_s0 + $0x160] sm:$0xff] }
   0xe   :  { %585 = vmatprep.subr.bf16.mxu1 %v688_v0  ;;  %v601_v56 = vpack.c.bf16 %v476_v54, %v475_v53  ;;  %v36_v57 = vld [vmem:[%s1119_s0 + $0x90] sm:$0xff]  ;;  %v477_v59 = vld [vmem:[%s1119_s0 + $0x158] sm:$0xff]  ;;  %v434_v61 = vld [vmem:[%s1121_s2] sm:$0xff] }
   0xf   :  { %v568_v62 = vpack.c.bf16 %v37_v58, %v36_v57  ;;  %438 = vperm.xlu0 %687, %v434_v61   ;;  %v604_v63 = vpack.c.bf16 %v478_v60, %v477_v59  ;;  %v38_v1 = vld [vmem:[%s1119_s0 + $0xa0] sm:$0xff]  ;;  %v39_v2 = vld [vmem:[%s1119_s0 + $0xa8] sm:$0xff]  ;;  %v480_v5 = vld [vmem:[%s1119_s0 + $0x170] sm:$0xff] }
  0x10   :  { %551 = vmatpush1.bf16.msra.mxu0 %v550_v24  ;;  %v435_v3 = vld [vmem:[%s1121_s2 + $0x8] sm:$0xff]  ;;  %v571_v6 = vpack.c.bf16 %v39_v2, %v38_v1  ;;  %v40_v8 = vld [vmem:[%s1119_s0 + $0xb0] sm:$0xff]  ;;  %v41_v9 = vld [vmem:[%s1119_s0 + $0xb8] sm:$0xff] }
  0x11   :  { %587 = vmatpush1.bf16.msra.mxu1 %v586_v25  ;;  %552 = vmatprep.subr.bf16.mxu0 %v688_v0  ;;  %v479_v4 = vld [vmem:[%s1119_s0 + $0x168] sm:$0xff]  ;;  %v481_v10 = vld [vmem:[%s1119_s0 + $0x178] sm:$0xff]  ;;  %v482_v11 = vld [vmem:[%s1119_s0 + $0x180] sm:$0xff]  ;;  %v574_v12 = vpack.c.bf16 %v41_v9, %v40_v8 }
  0x12   :  { %588 = vmatprep.subr.bf16.mxu1 %v688_v0  ;;  %v607_v7 = vpack.c.bf16 %v480_v5, %v479_v4  ;;  %v610_v13 = vpack.c.bf16 %v482_v11, %v481_v10  ;;  %v486_v14 = vld [vmem:[%s1119_s0 + $0x190] sm:$0xff]  ;;  %v487_v15 = vld [vmem:[%s1119_s0 + $0x198] sm:$0xff]  ;;  %v42_v17 = vld [vmem:[%s1119_s0 + $0xc0] sm:$0xff] }
  0x13   :  { %443 = vperm.xlu0 %687, %v435_v3   ;;  %v513_v18 = vld [vmem:[%s1119_s0 + $0x258] sm:$0xff]  ;;  %v514_v19 = vld [vmem:[%s1119_s0 + $0x260] sm:$0xff]  ;;  %v483_v21 = vld [vmem:[%s1119_s0 + $0x188] sm:$0xff]  ;;  %v613_v22 = vpack.c.bf16 %v487_v15, %v486_v14 }
  0x14   :  { %554 = vmatpush1.bf16.msra.mxu0 %v553_v30  ;;  %v914_v20 = vld [vmem:[%s1120_s1] sm:$0xff]  ;;  %v649_v23 = vpack.c.bf16 %v514_v19, %v513_v18  ;;  %v489_v25 = vld [vmem:[%s1119_s0 + $0x1a8] sm:$0xff]  ;;  %v516_v27 = vld [vmem:[%s1119_s0 + $0x270] sm:$0xff] }
  0x15   :  { %590 = vmatpush1.bf16.msra.mxu1 %v589_v31  ;;  %555 = vmatprep.subr.bf16.mxu0 %v688_v0  ;;  %v488_v24 = vld [vmem:[%s1119_s0 + $0x1a0] sm:$0xff]  ;;  %v515_v26 = vld [vmem:[%s1119_s0 + $0x268] sm:$0xff]  ;;  %v937_v28 = vld [vmem:[%s1120_s1 + $0x18] sm:$0xff] }
  0x16   :  { %591 = vmatprep.subr.bf16.mxu1 %v688_v0  ;;  %v616_v29 = vpack.c.bf16 %v489_v25, %v488_v24  ;;  %v943_v30 = vld [vmem:[%s1120_s1 + $0x10] sm:$0xff]  ;;  %v652_v31 = vpack.c.bf16 %v516_v27, %v515_v26  ;;  %v491_v33 = vld [vmem:[%s1119_s0 + $0x1b8] sm:$0xff]  ;;  %v518_v36 = vld [vmem:[%s1119_s0 + $0x280] sm:$0xff] }
  0x17   :  { %v490_v32 = vld [vmem:[%s1119_s0 + $0x1b0] sm:$0xff]  ;;  %v517_v35 = vld [vmem:[%s1119_s0 + $0x278] sm:$0xff]  ;;  %v492_v39 = vld [vmem:[%s1119_s0 + $0x1c0] sm:$0xff] }
  0x18   :  { %557 = vmatpush1.bf16.msra.mxu0 %v556_v37  ;;  %v619_v37 = vpack.c.bf16 %v491_v33, %v490_v32  ;;  %v493_v40 = vld [vmem:[%s1119_s0 + $0x1c8] sm:$0xff]  ;;  %v520_v42 = vld [vmem:[%s1119_s0 + $0x290] sm:$0xff]  ;;  %v495_v46 = vld [vmem:[%s1119_s0 + $0x1d8] sm:$0xff] }
  0x19   :  { %593 = vmatpush1.bf16.msra.mxu1 %v592_v38  ;;  %558 = vmatprep.subr.bf16.mxu0 %v688_v0  ;;  %v655_v38 = vpack.c.bf16 %v518_v36, %v517_v35  ;;  %v519_v41 = vld [vmem:[%s1119_s0 + $0x288] sm:$0xff]  ;;  %v494_v45 = vld [vmem:[%s1119_s0 + $0x1d0] sm:$0xff]  ;;  %v522_v47 = vld [vmem:[%s1119_s0 + $0x2a0] sm:$0xff] }
  0x1a   :  { %594 = vmatprep.subr.bf16.mxu1 %v688_v0  ;;  %v625_v48 = vpack.c.bf16 %v495_v46, %v494_v45  ;;  %v497_v51 = vld [vmem:[%s1119_s0 + $0x1e8] sm:$0xff]  ;;  %v524_v53 = vld [vmem:[%s1119_s0 + $0x2b0] sm:$0xff]  ;;  %v499_v57 = vld [vmem:[%s1119_s0 + $0x1f8] sm:$0xff] }
  0x1b   :  { %v523_v52 = vld [vmem:[%s1119_s0 + $0x2a8] sm:$0xff]  ;;  %v525_v58 = vld [vmem:[%s1119_s0 + $0x2b8] sm:$0xff]  ;;  %v526_v59 = vld [vmem:[%s1119_s0 + $0x2c0] sm:$0xff] }
  0x1c   :  { %560 = vmatpush1.bf16.msra.mxu0 %v559_v43  ;;  %v622_v43 = vpack.c.bf16 %v493_v40, %v492_v39  ;;  %v667_v61 = vpack.c.bf16 %v526_v59, %v525_v58  ;;  %v527_v1 = vld [vmem:[%s1119_s0 + $0x2c8] sm:$0xff]  ;;  %v528_v2 = vld [vmem:[%s1119_s0 + $0x2d0] sm:$0xff]  ;;  %v530_v8 = vld [vmem:[%s1119_s0 + $0x2e0] sm:$0xff] }
  0x1d   :  { %596 = vmatpush1.bf16.msra.mxu1 %v595_v44  ;;  %561 = vmatprep.subr.bf16.mxu0 %v688_v0  ;;  %v658_v44 = vpack.c.bf16 %v520_v42, %v519_v41  ;;  %v670_v4 = vpack.c.bf16 %v528_v2, %v527_v1  ;;  %v502_v5 = vld [vmem:[%s1119_s0 + $0x210] sm:$0xff]  ;;  %v504_v11 = vld [vmem:[%s1119_s0 + $0x220] sm:$0xff]  ;;  %v507_v19 = vld [vmem:[%s1119_s0 + $0x238] sm:$0xff] }
  0x1e   :  { %597 = vmatprep.subr.bf16.mxu1 %v688_v0  ;;  %v532_v14 = vld [vmem:[%s1119_s0 + $0x2f0] sm:$0xff]  ;;  %v508_v25 = vld [vmem:[%s1119_s0 + $0x240] sm:$0xff]  ;;  %v509_v26 = vld [vmem:[%s1119_s0 + $0x248] sm:$0xff] }
  0x1f   :  { %v506_v18 = vld [vmem:[%s1119_s0 + $0x230] sm:$0xff]  ;;  %v535_v27 = vld [vmem:[%s1119_s0 + $0x308] sm:$0xff]  ;;  %v537_v35 = vld [vmem:[%s1119_s0 + $0x318] sm:$0xff] }
  0x20   :  { %563 = vmatpush1.bf16.msra.mxu0 %v562_v49  ;;  %v510_v33 = vld [vmem:[%s1119_s0 + $0x250] sm:$0xff] }
  0x21   :  { %599 = vmatpush1.bf16.msra.mxu1 %v598_v50  ;;  %564 = vmatprep.subr.bf16.mxu0 %v688_v0  ;;  %v496_v50 = vld [vmem:[%s1119_s0 + $0x1e0] sm:$0xff] }
  0x22   :  { %600 = vmatprep.subr.bf16.mxu1 %v688_v0  ;;  %v628_v54 = vpack.c.bf16 %v497_v51, %v496_v50 }
  0x24   :  { %566 = vmatpush1.bf16.msra.mxu0 %v565_v55  ;;  %v664_v55 = vpack.c.bf16 %v524_v53, %v523_v52 }
  0x25   :  { %602 = vmatpush1.bf16.msra.mxu1 %v601_v56  ;;  %567 = vmatprep.subr.bf16.mxu0 %v688_v0  ;;  %v498_v56 = vld [vmem:[%s1119_s0 + $0x1f0] sm:$0xff] }
  0x26   :  { %603 = vmatprep.subr.bf16.mxu1 %v688_v0  ;;  %v631_v60 = vpack.c.bf16 %v499_v57, %v498_v56 }
  0x28   :  { %569 = vmatpush1.bf16.msra.mxu0 %v568_v62  ;;  %v500_v62 = vld [vmem:[%s1119_s0 + $0x200] sm:$0xff] }
  0x29   :  { %605 = vmatpush1.bf16.msra.mxu1 %v604_v63  ;;  %570 = vmatprep.subr.bf16.mxu0 %v688_v0  ;;  %v501_v63 = vld [vmem:[%s1119_s0 + $0x208] sm:$0xff] }
  0x2a   :  { %606 = vmatprep.subr.bf16.mxu1 %v688_v0  ;;  %v634_v3 = vpack.c.bf16 %v501_v63, %v500_v62 }
  0x2c   :  { %572 = vmatpush1.bf16.msra.mxu0 %v571_v6  ;;  %v503_v6 = vld [vmem:[%s1119_s0 + $0x218] sm:$0xff] }
  0x2d   :  { %608 = vmatpush1.bf16.msra.mxu1 %v607_v7  ;;  %573 = vmatprep.subr.bf16.mxu0 %v688_v0  ;;  %v529_v7 = vld [vmem:[%s1119_s0 + $0x2d8] sm:$0xff]  ;;  %v637_v9 = vpack.c.bf16 %v503_v6, %v502_v5 }
  0x2e   :  { %609 = vmatprep.subr.bf16.mxu1 %v688_v0  ;;  %v673_v10 = vpack.c.bf16 %v530_v8, %v529_v7 }
  0x30   :  { %575 = vmatpush1.bf16.msra.mxu0 %v574_v12  ;;  %v505_v12 = vld [vmem:[%s1119_s0 + $0x228] sm:$0xff] }
  0x31   :  { %611 = vmatpush1.bf16.msra.mxu1 %v610_v13  ;;  %98 = vmatprep.subr.mxu0 %v690_v16  ;;  %v531_v13 = vld [vmem:[%s1119_s0 + $0x2e8] sm:$0xff]  ;;  %v640_v15 = vpack.c.bf16 %v505_v12, %v504_v11 }
  0x32   :  { %199 = vmatprep.subr.mxu1 %v690_v16 }
  0x34   :  { %99 = vmatpush1.msra.mxu0 %v42_v17  ;;  %v676_v17 = vpack.c.bf16 %v532_v14, %v531_v13 }
  0x35   :  { %115 = vmatmul.mubr.f32.vlgmr.msra.gmra.mrb[0].mxu0 %v914_v20  ;;  %200 = vmatpush1.msra.mxu1 %v483_v21  ;;  %v533_v21 = vld [vmem:[%s1119_s0 + $0x2f8] sm:$0xff] }
  0x36   :  { %612 = vmatprep.subr.bf16.mxu0 %v688_v0  ;;  %216 = vmatmul.mubr.f32.vlgmr.msra.gmra.mrb[0].mxu1 %v914_v20 }
  0x37   :  { %614 = vmatpush1.bf16.msra.mxu0 %v613_v22  ;;  %648 = vmatprep.subr.bf16.mxu1 %v688_v0  ;;  %v534_v22 = vld [vmem:[%s1119_s0 + $0x300] sm:$0xff] }
  0x38   :  { %650 = vmatpush1.bf16.msra.mxu1 %v649_v23  ;;  %615 = vmatprep.subr.bf16.mxu0 %v688_v0  ;;  %v643_v23 = vpack.c.bf16 %v507_v19, %v506_v18  ;;  %v679_v24 = vpack.c.bf16 %v534_v22, %v533_v21 }
  0x39   :  { %651 = vmatprep.subr.bf16.mxu1 %v688_v0  ;;  %458 = vmatprep.mubr.msk.f32.mxu0 %vm43_vm0, %v937_v28 }
  0x3a   :  { %120 = vmatmul.mubr.f32.gmra.mrb[2].mxu0 %v943_v30  ;;  %485 = vmatprep.mubr.msk.f32.mxu1 %vm43_vm0, %v937_v28 }
  0x3b   :  { %617 = vmatpush1.bf16.msra.mxu0 %v616_v29  ;;  %221 = vmatmul.mubr.f32.gmra.mrb[2].mxu1 %v943_v30  ;;  %v536_v29 = vld [vmem:[%s1119_s0 + $0x310] sm:$0xff] }
  0x3c   :  { %653 = vmatpush1.bf16.msra.mxu1 %v652_v31  ;;  %618 = vmatprep.subr.bf16.mxu0 %v688_v0  ;;  %v646_v31 = vpack.c.bf16 %v509_v26, %v508_v25  ;;  %v682_v32 = vpack.c.bf16 %v536_v29, %v535_v27 }
  0x3d   :  { %654 = vmatprep.subr.bf16.mxu1 %v688_v0  ;;  %511 = vmatprep.mubr.msk.f32.mxu0 %vm43_vm0, %v789_v34 }
  0x3e   :  { %538 = vmatprep.mubr.msk.f32.mxu1 %vm43_vm0, %v789_v34  ;;  %v521_v34 = vld [vmem:[%s1119_s0 + $0x298] sm:$0xff] }
  0x3f   :  { %620 = vmatpush1.bf16.msra.mxu0 %v619_v37  ;;  %v661_v49 = vpack.c.bf16 %v522_v47, %v521_v34 }
  0x40   :  { %656 = vmatpush1.bf16.msra.mxu1 %v655_v38  ;;  %621 = vmatprep.subr.bf16.mxu0 %v688_v0 }
  0x41   :  { %657 = vmatprep.subr.bf16.mxu1 %v688_v0 }
  0x43   :  { %623 = vmatpush1.bf16.msra.mxu0 %v622_v43 }
  0x44   :  { %659 = vmatpush1.bf16.msra.mxu1 %v658_v44  ;;  %624 = vmatprep.subr.bf16.mxu0 %v688_v0 }
  0x45   :  { %660 = vmatprep.subr.bf16.mxu1 %v688_v0 }
  0x47   :  { %626 = vmatpush1.bf16.msra.mxu0 %v625_v48 }
  0x48   :  { %662 = vmatpush1.bf16.msra.mxu1 %v661_v49  ;;  %627 = vmatprep.subr.bf16.mxu0 %v688_v0 }
  0x49   :  { %663 = vmatprep.subr.bf16.mxu1 %v688_v0 }
  0x4b   :  { %629 = vmatpush1.bf16.msra.mxu0 %v628_v54 }
  0x4c   :  { %665 = vmatpush1.bf16.msra.mxu1 %v664_v55  ;;  %630 = vmatprep.subr.bf16.mxu0 %v688_v0 }
  0x4d   :  { %666 = vmatprep.subr.bf16.mxu1 %v688_v0 }
  0x4f   :  { %632 = vmatpush1.bf16.msra.mxu0 %v631_v60 }
  0x50   :  { %668 = vmatpush1.bf16.msra.mxu1 %v667_v61  ;;  %633 = vmatprep.subr.bf16.mxu0 %v688_v0 }
  0x51   :  { %669 = vmatprep.subr.bf16.mxu1 %v688_v0 }
  0x53   :  { %635 = vmatpush1.bf16.msra.mxu0 %v634_v3 }
  0x54   :  { %671 = vmatpush1.bf16.msra.mxu1 %v670_v4  ;;  %636 = vmatprep.subr.bf16.mxu0 %v688_v0 }
  0x55   :  { %672 = vmatprep.subr.bf16.mxu1 %v688_v0 }
  0x57   :  { %638 = vmatpush1.bf16.msra.mxu0 %v637_v9 }
  0x58   :  { %674 = vmatpush1.bf16.msra.mxu1 %v673_v10  ;;  %639 = vmatprep.subr.bf16.mxu0 %v688_v0 }
  0x59   :  { %675 = vmatprep.subr.bf16.mxu1 %v688_v0 }
  0x5b   :  { %641 = vmatpush1.bf16.msra.mxu0 %v640_v15 }
  0x5c   :  { %677 = vmatpush1.bf16.msra.mxu1 %v676_v17  ;;  %642 = vmatprep.subr.bf16.mxu0 %v688_v0 }
  0x5d   :  { %678 = vmatprep.subr.bf16.mxu1 %v688_v0 }
  0x5f   :  { %644 = vmatpush1.bf16.msra.mxu0 %v643_v23 }
  0x60   :  { %680 = vmatpush1.bf16.msra.mxu1 %v679_v24  ;;  %645 = vmatprep.subr.bf16.mxu0 %v688_v0 }
  0x61   :  { %681 = vmatprep.subr.bf16.mxu1 %v688_v0 }
  0x63   :  { %647 = vmatpush1.bf16.msra.mxu0 %v646_v31 }
  0x64   :  { %683 = vmatpush1.bf16.msra.mxu1 %v682_v32  ;;  %302 = vmatprep.subr.mxu0 %v690_v16 }
  0x65   :  { %405 = vmatprep.subr.mxu1 %v690_v16 }
  0x67   :  { %303 = vmatpush1.msra.mxu0 %v510_v33 }
  0x68   :  { %319 = vmatmul.mubr.f32.vlgmr.msra.gmra.mrb[4].mxu0 %v914_v20  ;;  %406 = vmatpush1.msra.mxu1 %v537_v35 }
  0x69   :  { %422 = vmatmul.mubr.f32.vlgmr.msra.gmra.mrb[4].mxu1 %v914_v20  ;;  %512 = vmatprep.mubr.msk.f32.mxu0 %vm43_vm0, %v937_v28 }
  0x6a   :  { %539 = vmatprep.mubr.msk.f32.mxu1 %vm43_vm0, %v937_v28 }
  0x6c   :  { %324 = vmatmul.mubr.f32.gmra.mrb[6].mxu0 %v943_v30 }
  0x6d   :  { %427 = vmatmul.mubr.f32.gmra.mrb[6].mxu1 %v943_v30 }
  0x8e   :  { %v439_v34 = vpop.permute.xlu0 %438 }
  0x92   :  { %v444_v55 = vpop.permute.xlu0 %443 }
 0x108   :  { %v116_v0 = vpop.f32.mrb[0].mxu0 }
 0x109   :  { %v118_v16 = vpop.f32.mrb[1].mxu0  ;;  %v217_v36 = vpop.f32.mrb[0].mxu1 }
 0x10a   :  { %v226_v37 = vmax.f32 %v116_v0, %v217_v36  ;;  %v219_v38 = vpop.f32.mrb[1].mxu1 }
 0x10d   :  { %v121_v39 = vpop.f32.mrb[2].mxu0 }
 0x10e   :  { %v123_v40 = vpop.f32.mrb[3].mxu0  ;;  %v222_v41 = vpop.f32.mrb[2].mxu1 }
 0x10f   :  { %v227_v42 = vmax.f32 %v121_v39, %v222_v41  ;;  %v224_v20 = vpop.f32.mrb[3].mxu1 }
 0x13b   :  { %v320_v43 = vpop.f32.mrb[4].mxu0 }
 0x13c   :  { %v329_v44 = vmax.f32 %v226_v37, %v320_v43  ;;  %v322_v45 = vpop.f32.mrb[5].mxu0  ;;  %v423_v46 = vpop.f32.mrb[4].mxu1 }
 0x13d   :  { %v425_v28 = vpop.f32.mrb[5].mxu1 }
 0x13e   :  { %v432_v47 = vmax.f32 %v329_v44, %v423_v46 }
 0x13f   :  { %v325_v48 = vpop.f32.mrb[6].mxu0 }
 0x140   :  { %v446_v49 = vadd.f32 %v439_v34, %v432_v47  ;;  %v330_v30 = vmax.f32 %v227_v42, %v325_v48  ;;  %v327_v50 = vpop.f32.mrb[7].mxu0  ;;  %v428_v51 = vpop.f32.mrb[6].mxu1 }
 0x141   :  { %v430_v52 = vpop.f32.mrb[7].mxu1 }
 0x142   :  { %v448_v53 = vmax.f32 %v446_v49, 0.0  ;;  %v433_v54 = vmax.f32 %v330_v30, %v428_v51 }
 0x144   :  { %451 = vst.msk [vmem:[%s1122_s3] sm:$0xff] %vm450_vm1, %v448_v53  ;;  %v447_v56 = vadd.f32 %v444_v55, %v433_v54 }
 0x146   :  { %v449_v57 = vmax.f32 %v447_v56, 0.0 }
 0x148   :  { %452 = vst.msk [vmem:[%s1122_s3 + $0x8] sm:$0xff] %vm450_vm1, %v449_v57 }

// kernel: network_forward.5
= control target key start
LH: loop header
LB: loop body
LE: loop exit
PB: predicated region body
PF: predicated region fallthrough
CT: control target
= control target key end

     0   :  { %vm43_vm0 = vcmask 1040384   ;;  %v2239_v3 = vmov 0.0|0.0   ;;  %vm2240_vm1 = vmmov 0   ;;  %v2241_v11 = vmov 0.0   ;;  %s2778_s0 = inlined_call_operand.vmem [shape: f32[16,2,25], index: 0, kind: input, shape index: {}]   ;;  %s2779_s1 = inlined_call_operand.vmem [shape: f32[16,25,128], index: 1, kind: input, shape index: {}]   ;;  %s2780_s2 = inlined_call_operand.vmem [shape: f32[1,128], index: 2, kind: input, shape index: {}]   ;;  %s2781_s3 = inlined_call_operand.vmem [shape: f32[128,128], index: 3, kind: input, shape index: {}]   ;;  %s2782_s4 = inlined_call_operand.vmem [shape: f32[1,128], index: 4, kind: input, shape index: {}]   ;;  %s2783_s5 = inlined_call_operand.vmem [shape: f32[128,128], index: 5, kind: input, shape index: {}]   ;;  %s2784_s6 = inlined_call_operand.vmem [shape: f32[1,128], index: 6, kind: input, shape index: {}]   ;;  %s2785_s7 = inlined_call_operand.hbm [shape: f32[2,128], index: 7, kind: output, shape index: {}]  }
   0x1   :  { %v1581_v0 = vld [vmem:[%s2779_s1 + $0x20] sm:$0xff]  ;;  %v1582_v1 = vld [vmem:[%s2779_s1 + $0x28] sm:$0xff]  ;;  %2050 = vmatprep.subr.bf16.mxu0 %v2239_v3  ;;  %2057 = vmatprep.subr.bf16.mxu1 %v2239_v3  ;;  %v1583_v6 = vld [vmem:[%s2779_s1 + $0x30] sm:$0xff]  ;;  %vm2242_vm2 = vmmov 1   ;;  %vm39_vm4 = vcmask 203776  }
   0x2   :  { %v28_v2 = vld [vmem:[%s2779_s1] sm:$0xff]  ;;  %v2051_v4 = vpack.c.bf16 %v1582_v1, %v1581_v0  ;;  %v29_v5 = vld [vmem:[%s2779_s1 + $0x8] sm:$0xff]  ;;  %v1584_v7 = vld [vmem:[%s2779_s1 + $0x38] sm:$0x1]  ;;  %1812 = vmatprep.mubr.msk.f32.mxu0 %vm2240_vm1, %v2241_v11  ;;  %1823 = vmatprep.mubr.msk.f32.mxu1 %vm2240_vm1, %v2241_v11 }
   0x3   :  { %v2058_v8 = vpack.c.bf16 %v29_v5, %v28_v2  ;;  %v30_v9 = vld [vmem:[%s2779_s1 + $0x10] sm:$0xff]  ;;  %v31_v10 = vld [vmem:[%s2779_s1 + $0x18] sm:$0x1]  ;;  %v2054_v12 = vpack.c.bf16 %v1584_v7, %v1583_v6  ;;  %vm2316_vm3 = vmpackc.low %vm43_vm0, %vm2242_vm2 }
   0x4   :  { %2052 = vmatpush3.bf16.msra.mxu0 %v2051_v4  ;;  %v2061_v14 = vpack.c.bf16 %v31_v10, %v30_v9  ;;  %v1590_v15 = vld [vmem:[%s2779_s1 + $0x40] sm:$0xff]  ;;  %v1591_v16 = vld [vmem:[%s2779_s1 + $0x48] sm:$0xff]  ;;  %v1592_v23 = vld [vmem:[%s2779_s1 + $0x50] sm:$0xff] }
   0x5   :  { %2059 = vmatpush3.bf16.msra.mxu1 %v2058_v8  ;;  %2053 = vmatprep.subr.bf16.mxu0 %v2239_v3  ;;  %v1597_v17 = vld [vmem:[%s2779_s1 + $0x60] sm:$0xff]  ;;  %v1598_v18 = vld [vmem:[%s2779_s1 + $0x68] sm:$0xff]  ;;  %v2065_v20 = vpack.c.bf16 %v1591_v16, %v1590_v15  ;;  %v1593_v24 = vld [vmem:[%s2779_s1 + $0x58] sm:$0x1] }
   0x6   :  { %2060 = vmatprep.subr.bf16.mxu1 %v2239_v3  ;;  %v1580_v19 = vld [vmem:[%s2778_s0 + $0x2] sm:$0x3]  ;;  %v27_v21 = vld [vmem:[%s2778_s0] sm:$0x3]  ;;  %v2072_v22 = vpack.c.bf16 %v1598_v18, %v1597_v17  ;;  %v1599_v25 = vld [vmem:[%s2779_s1 + $0x70] sm:$0xff]  ;;  %v2068_v27 = vpack.c.bf16 %v1593_v24, %v1592_v23 }
   0x7   :  { %v1600_v26 = vld [vmem:[%s2779_s1 + $0x78] sm:$0x1]  ;;  %v1604_v29 = vld [vmem:[%s2779_s1 + $0x80] sm:$0xff]  ;;  %v1605_v30 = vld [vmem:[%s2779_s1 + $0x88] sm:$0xff] }
   0x8   :  { %2056 = vmatpush3.bf16.msk.msra.mxu0 %vm2316_vm3, %v2054_v12  ;;  %v2075_v28 = vpack.c.bf16 %v1600_v26, %v1599_v25  ;;  %v1611_v31 = vld [vmem:[%s2779_s1 + $0xa0] sm:$0xff]  ;;  %v1612_v32 = vld [vmem:[%s2779_s1 + $0xa8] sm:$0xff]  ;;  %v2079_v34 = vpack.c.bf16 %v1605_v30, %v1604_v29  ;;  %v1606_v37 = vld [vmem:[%s2779_s1 + $0x90] sm:$0xff] }
   0x9   :  { %2063 = vmatpush3.bf16.msk.msra.mxu1 %vm2316_vm3, %v2061_v14  ;;  %2064 = vmatprep.subr.bf16.mxu0 %v2239_v3  ;;  %v1589_v33 = vld [vmem:[%s2778_s0 + $0x4] sm:$0x3]  ;;  %v1596_v35 = vld [vmem:[%s2778_s0 + $0x6] sm:$0x3]  ;;  %v2086_v36 = vpack.c.bf16 %v1612_v32, %v1611_v31  ;;  %v1607_v38 = vld [vmem:[%s2779_s1 + $0x98] sm:$0x1] }
   0xa   :  { %2071 = vmatprep.subr.bf16.mxu1 %v2239_v3  ;;  %v1613_v39 = vld [vmem:[%s2779_s1 + $0xb0] sm:$0xff]  ;;  %v1614_v40 = vld [vmem:[%s2779_s1 + $0xb8] sm:$0x1]  ;;  %v2082_v41 = vpack.c.bf16 %v1607_v38, %v1606_v37  ;;  %v1618_v43 = vld [vmem:[%s2779_s1 + $0xc0] sm:$0xff] }
   0xb   :  { %1813 = vmatmul.mubr.msk.f32.vlgmr.msra.gmra.mrb[0].mxu0 %vm39_vm4, %v1580_v19  ;;  %v2089_v42 = vpack.c.bf16 %v1614_v40, %v1613_v39  ;;  %v1619_v44 = vld [vmem:[%s2779_s1 + $0xc8] sm:$0xff]  ;;  %v1625_v45 = vld [vmem:[%s2779_s1 + $0xe0] sm:$0xff]  ;;  %v1620_v51 = vld [vmem:[%s2779_s1 + $0xd0] sm:$0xff] }
   0xc   :  { %1824 = vmatmul.mubr.msk.f32.vlgmr.msra.gmra.mrb[0].mxu1 %vm39_vm4, %v27_v21  ;;  %2066 = vmatpush3.bf16.msra.mxu0 %v2065_v20  ;;  %v1626_v46 = vld [vmem:[%s2779_s1 + $0xe8] sm:$0xff]  ;;  %v2093_v48 = vpack.c.bf16 %v1619_v44, %v1618_v43  ;;  %v1621_v52 = vld [vmem:[%s2779_s1 + $0xd8] sm:$0x1]  ;;  %v1627_v53 = vld [vmem:[%s2779_s1 + $0xf0] sm:$0xff] }
   0xd   :  { %2073 = vmatpush3.bf16.msra.mxu1 %v2072_v22  ;;  %2067 = vmatprep.subr.bf16.mxu0 %v2239_v3  ;;  %v1603_v47 = vld [vmem:[%s2778_s0 + $0x8] sm:$0x3]  ;;  %v1610_v49 = vld [vmem:[%s2778_s0 + $0xa] sm:$0x3]  ;;  %v2100_v50 = vpack.c.bf16 %v1626_v46, %v1625_v45  ;;  %v1628_v54 = vld [vmem:[%s2779_s1 + $0xf8] sm:$0x1]  ;;  %v2096_v55 = vpack.c.bf16 %v1621_v52, %v1620_v51 }
   0xe   :  { %2074 = vmatprep.subr.bf16.mxu1 %v2239_v3  ;;  %1834 = vmatprep.mubr.msk.f32.mxu0 %vm2240_vm1, %v2241_v11 }
   0xf   :  { %1845 = vmatprep.mubr.msk.f32.mxu1 %vm2240_vm1, %v2241_v11 }
  0x10   :  { %2070 = vmatpush3.bf16.msk.msra.mxu0 %vm2316_vm3, %v2068_v27 }
  0x11   :  { %2077 = vmatpush3.bf16.msk.msra.mxu1 %vm2316_vm3, %v2075_v28  ;;  %2078 = vmatprep.subr.bf16.mxu0 %v2239_v3 }
  0x12   :  { %2085 = vmatprep.subr.bf16.mxu1 %v2239_v3 }
  0x13   :  { %1835 = vmatmul.mubr.msk.f32.vlgmr.msra.gmra.mrb[2].mxu0 %vm39_vm4, %v1589_v33 }
  0x14   :  { %2080 = vmatpush3.bf16.msra.mxu0 %v2079_v34  ;;  %1846 = vmatmul.mubr.msk.f32.vlgmr.msra.gmra.mrb[2].mxu1 %vm39_vm4, %v1596_v35 }
  0x15   :  { %2087 = vmatpush3.bf16.msra.mxu1 %v2086_v36  ;;  %2081 = vmatprep.subr.bf16.mxu0 %v2239_v3 }
  0x16   :  { %2088 = vmatprep.subr.bf16.mxu1 %v2239_v3  ;;  %1856 = vmatprep.mubr.msk.f32.mxu0 %vm2240_vm1, %v2241_v11 }
  0x17   :  { %1867 = vmatprep.mubr.msk.f32.mxu1 %vm2240_vm1, %v2241_v11 }
  0x18   :  { %2084 = vmatpush3.bf16.msk.msra.mxu0 %vm2316_vm3, %v2082_v41 }
  0x19   :  { %2091 = vmatpush3.bf16.msk.msra.mxu1 %vm2316_vm3, %v2089_v42  ;;  %2092 = vmatprep.subr.bf16.mxu0 %v2239_v3 }
  0x1a   :  { %2099 = vmatprep.subr.bf16.mxu1 %v2239_v3 }
  0x1b   :  { %1857 = vmatmul.mubr.msk.f32.vlgmr.msra.gmra.mrb[4].mxu0 %vm39_vm4, %v1603_v47 }
  0x1c   :  { %2094 = vmatpush3.bf16.msra.mxu0 %v2093_v48  ;;  %1868 = vmatmul.mubr.msk.f32.vlgmr.msra.gmra.mrb[4].mxu1 %vm39_vm4, %v1610_v49 }
  0x1d   :  { %12 = vsyncpa [#allocation3], 0  ;;  %2101 = vmatpush3.bf16.msra.mxu1 %v2100_v50  ;;  %2095 = vmatprep.subr.bf16.mxu0 %v2239_v3  ;;  %v2103_v56 = vpack.c.bf16 %v1628_v54, %v1627_v53  ;;  %v1632_v57 = vld [vmem:[%s2779_s1 + $0x100] sm:$0xff]  ;;  %v1633_v58 = vld [vmem:[%s2779_s1 + $0x108] sm:$0xff]  ;;  %s2243_s15 = smov [#allocation2]  }
  0x1e   :  { %2102 = vmatprep.subr.bf16.mxu1 %v2239_v3  ;;  %1878 = vmatprep.mubr.msk.f32.mxu0 %vm2240_vm1, %v2241_v11  ;;  %v1639_v59 = vld [vmem:[%s2779_s1 + $0x120] sm:$0xff]  ;;  %v1640_v60 = vld [vmem:[%s2779_s1 + $0x128] sm:$0xff]  ;;  %v2107_v62 = vpack.c.bf16 %v1633_v58, %v1632_v57  ;;  %v1634_v1 = vld [vmem:[%s2779_s1 + $0x110] sm:$0xff]  ;;  %s1572_s16 = sshll.u32 %s2243_s15, 4  ;;  %s1573_s16 = int_to_ptr.vmem [resolvable:$true] %s1572_s16 }
  0x1f   :  { %1889 = vmatprep.mubr.msk.f32.mxu1 %vm2240_vm1, %v2241_v11  ;;  %v1617_v61 = vld [vmem:[%s2778_s0 + $0xc] sm:$0x3]  ;;  %v1624_v63 = vld [vmem:[%s2778_s0 + $0xe] sm:$0x3]  ;;  %v2114_v0 = vpack.c.bf16 %v1640_v60, %v1639_v59  ;;  %v1635_v2 = vld [vmem:[%s2779_s1 + $0x118] sm:$0x1]  ;;  %p2220_p1 = scmp.lt.s32.totalorder %s1573_s16, %s1573_s16 }
  0x20   :  { %2098 = vmatpush3.bf16.msk.msra.mxu0 %vm2316_vm3, %v2096_v55  ;;  %v1641_v4 = vld [vmem:[%s2779_s1 + $0x130] sm:$0xff]  ;;  %v1642_v5 = vld [vmem:[%s2779_s1 + $0x138] sm:$0x1]  ;;  %v2110_v6 = vpack.c.bf16 %v1635_v2, %v1634_v1  ;;  %v1646_v8 = vld [vmem:[%s2779_s1 + $0x140] sm:$0xff] }
  0x21   :  { %2105 = vmatpush3.bf16.msk.msra.mxu1 %vm2316_vm3, %v2103_v56  ;;  %2106 = vmatprep.subr.bf16.mxu0 %v2239_v3  ;;  %v2117_v7 = vpack.c.bf16 %v1642_v5, %v1641_v4  ;;  %v1647_v9 = vld [vmem:[%s2779_s1 + $0x148] sm:$0xff]  ;;  %v1653_v10 = vld [vmem:[%s2779_s1 + $0x160] sm:$0xff]  ;;  %v1631_v14 = vld [vmem:[%s2778_s0 + $0x10] sm:$0x3] }
  0x22   :  { %2113 = vmatprep.subr.bf16.mxu1 %v2239_v3  ;;  %v1654_v12 = vld [vmem:[%s2779_s1 + $0x168] sm:$0xff]  ;;  %v2121_v15 = vpack.c.bf16 %v1647_v9, %v1646_v8  ;;  %v1638_v16 = vld [vmem:[%s2778_s0 + $0x12] sm:$0x3]  ;;  %v1649_v19 = vld [vmem:[%s2779_s1 + $0x158] sm:$0x1] }
  0x23   :  { %1879 = vmatmul.mubr.msk.f32.vlgmr.msra.gmra.mrb[6].mxu0 %vm39_vm4, %v1617_v61  ;;  %v2128_v17 = vpack.c.bf16 %v1654_v12, %v1653_v10  ;;  %v1648_v18 = vld [vmem:[%s2779_s1 + $0x150] sm:$0xff]  ;;  %v1656_v21 = vld [vmem:[%s2779_s1 + $0x178] sm:$0x1]  ;;  %v1660_v24 = vld [vmem:[%s2779_s1 + $0x180] sm:$0xff] }
  0x24   :  { %2108 = vmatpush3.bf16.msra.mxu0 %v2107_v62  ;;  %1890 = vmatmul.mubr.msk.f32.vlgmr.msra.gmra.mrb[6].mxu1 %vm39_vm4, %v1624_v63  ;;  %v1655_v20 = vld [vmem:[%s2779_s1 + $0x170] sm:$0xff]  ;;  %v2124_v22 = vpack.c.bf16 %v1649_v19, %v1648_v18  ;;  %v1661_v25 = vld [vmem:[%s2779_s1 + $0x188] sm:$0xff]  ;;  %v1667_v26 = vld [vmem:[%s2779_s1 + $0x1a0] sm:$0xff] }
  0x25   :  { %2115 = vmatpush3.bf16.msra.mxu1 %v2114_v0  ;;  %2109 = vmatprep.subr.bf16.mxu0 %v2239_v3  ;;  %v2131_v23 = vpack.c.bf16 %v1656_v21, %v1655_v20  ;;  %v1668_v27 = vld [vmem:[%s2779_s1 + $0x1a8] sm:$0xff]  ;;  %v1645_v28 = vld [vmem:[%s2778_s0 + $0x14] sm:$0x3]  ;;  %v2135_v29 = vpack.c.bf16 %v1661_v25, %v1660_v24  ;;  %v1652_v30 = vld [vmem:[%s2778_s0 + $0x16] sm:$0x3] }
  0x26   :  { %2116 = vmatprep.subr.bf16.mxu1 %v2239_v3  ;;  %1900 = vmatprep.mubr.msk.f32.mxu0 %vm2240_vm1, %v2241_v11  ;;  %v2142_v31 = vpack.c.bf16 %v1668_v27, %v1667_v26  ;;  %v1662_v32 = vld [vmem:[%s2779_s1 + $0x190] sm:$0xff]  ;;  %v1663_v33 = vld [vmem:[%s2779_s1 + $0x198] sm:$0x1]  ;;  %v1674_v38 = vld [vmem:[%s2779_s1 + $0x1c0] sm:$0xff] }
  0x27   :  { %1911 = vmatprep.mubr.msk.f32.mxu1 %vm2240_vm1, %v2241_v11  ;;  %v1669_v34 = vld [vmem:[%s2779_s1 + $0x1b0] sm:$0xff]  ;;  %v1670_v35 = vld [vmem:[%s2779_s1 + $0x1b8] sm:$0x1]  ;;  %v2138_v36 = vpack.c.bf16 %v1663_v33, %v1662_v32  ;;  %v1675_v39 = vld [vmem:[%s2779_s1 + $0x1c8] sm:$0xff] }
  0x28   :  { %2112 = vmatpush3.bf16.msk.msra.mxu0 %vm2316_vm3, %v2110_v6  ;;  %v2145_v37 = vpack.c.bf16 %v1670_v35, %v1669_v34  ;;  %v1681_v40 = vld [vmem:[%s2779_s1 + $0x1e0] sm:$0xff]  ;;  %v1682_v41 = vld [vmem:[%s2779_s1 + $0x1e8] sm:$0xff]  ;;  %v1659_v42 = vld [vmem:[%s2778_s0 + $0x18] sm:$0x3]  ;;  %v2149_v43 = vpack.c.bf16 %v1675_v39, %v1674_v38 }
  0x29   :  { %2119 = vmatpush3.bf16.msk.msra.mxu1 %vm2316_vm3, %v2117_v7  ;;  %2120 = vmatprep.subr.bf16.mxu0 %v2239_v3  ;;  %v1666_v44 = vld [vmem:[%s2778_s0 + $0x1a] sm:$0x3]  ;;  %v2156_v45 = vpack.c.bf16 %v1682_v41, %v1681_v40  ;;  %v1676_v46 = vld [vmem:[%s2779_s1 + $0x1d0] sm:$0xff]  ;;  %v1677_v47 = vld [vmem:[%s2779_s1 + $0x1d8] sm:$0x1] }
  0x2a   :  { %2127 = vmatprep.subr.bf16.mxu1 %v2239_v3  ;;  %v1683_v48 = vld [vmem:[%s2779_s1 + $0x1f0] sm:$0xff]  ;;  %v1684_v49 = vld [vmem:[%s2779_s1 + $0x1f8] sm:$0x1]  ;;  %v2152_v50 = vpack.c.bf16 %v1677_v47, %v1676_v46  ;;  %v1673_v52 = vld [vmem:[%s2778_s0 + $0x1c] sm:$0x3] }
  0x2b   :  { %1901 = vmatmul.mubr.msk.f32.vlgmr.msra.gmra.mrb[8].mxu0 %vm39_vm4, %v1631_v14  ;;  %v2159_v51 = vpack.c.bf16 %v1684_v49, %v1683_v48  ;;  %v1680_v53 = vld [vmem:[%s2778_s0 + $0x1e] sm:$0x3]  ;;  %v1378_v13 = vld [vmem:[%s2781_s3] sm:$0xff]  ;;  %v1379_v54 = vld [vmem:[%s2781_s3 + $0x8] sm:$0xff] }
  0x2c   :  { %2122 = vmatpush3.bf16.msra.mxu0 %v2121_v15  ;;  %1912 = vmatmul.mubr.msk.f32.vlgmr.msra.gmra.mrb[8].mxu1 %vm39_vm4, %v1638_v16  ;;  %v2163_v55 = vpack.c.bf16 %v1379_v54, %v1378_v13  ;;  %v1380_v56 = vld [vmem:[%s2781_s3 + $0x10] sm:$0xff]  ;;  %v1382_v58 = vld [vmem:[%s2781_s3 + $0x20] sm:$0xff]  ;;  %v1383_v59 = vld [vmem:[%s2781_s3 + $0x28] sm:$0xff] }
  0x2d   :  { %2129 = vmatpush3.bf16.msra.mxu1 %v2128_v17  ;;  %2123 = vmatprep.subr.bf16.mxu0 %v2239_v3  ;;  %v2169_v60 = vpack.c.bf16 %v1383_v59, %v1382_v58  ;;  %v1384_v61 = vld [vmem:[%s2781_s3 + $0x30] sm:$0xff]  ;;  %v1385_v62 = vld [vmem:[%s2781_s3 + $0x38] sm:$0xff]  ;;  %v1386_v0 = vld [vmem:[%s2781_s3 + $0x40] sm:$0xff] }
  0x2e   :  { %2130 = vmatprep.subr.bf16.mxu1 %v2239_v3  ;;  %1922 = vmatprep.mubr.msk.f32.mxu0 %vm2240_vm1, %v2241_v11  ;;  %v2172_v63 = vpack.c.bf16 %v1385_v62, %v1384_v61  ;;  %v1387_v1 = vld [vmem:[%s2781_s3 + $0x48] sm:$0xff]  ;;  %v1388_v4 = vld [vmem:[%s2781_s3 + $0x50] sm:$0xff]  ;;  %v1389_v5 = vld [vmem:[%s2781_s3 + $0x58] sm:$0xff] }
  0x2f   :  { %1933 = vmatprep.mubr.msk.f32.mxu1 %vm2240_vm1, %v2241_v11  ;;  %v2175_v2 = vpack.c.bf16 %v1387_v1, %v1386_v0  ;;  %v2178_v6 = vpack.c.bf16 %v1389_v5, %v1388_v4  ;;  %v1390_v7 = vld [vmem:[%s2781_s3 + $0x60] sm:$0xff]  ;;  %v1391_v8 = vld [vmem:[%s2781_s3 + $0x68] sm:$0xff]  ;;  %v1392_v10 = vld [vmem:[%s2781_s3 + $0x70] sm:$0xff] }
  0x30   :  { %2126 = vmatpush3.bf16.msk.msra.mxu0 %vm2316_vm3, %v2124_v22  ;;  %v2181_v9 = vpack.c.bf16 %v1391_v8, %v1390_v7  ;;  %v1393_v12 = vld [vmem:[%s2781_s3 + $0x78] sm:$0xff]  ;;  %v1472_v15 = vld [vmem:[%s2783_s5] sm:$0xff]  ;;  %v1473_v16 = vld [vmem:[%s2783_s5 + $0x8] sm:$0xff] }
  0x31   :  { %2133 = vmatpush3.bf16.msk.msra.mxu1 %vm2316_vm3, %v2131_v23  ;;  %2134 = vmatprep.subr.bf16.mxu0 %v2239_v3  ;;  %v2184_v14 = vpack.c.bf16 %v1393_v12, %v1392_v10  ;;  %v1474_v17 = vld [vmem:[%s2783_s5 + $0x10] sm:$0xff]  ;;  %v2187_v18 = vpack.c.bf16 %v1473_v16, %v1472_v15  ;;  %v1475_v19 = vld [vmem:[%s2783_s5 + $0x18] sm:$0xff]  ;;  %v1476_v21 = vld [vmem:[%s2783_s5 + $0x20] sm:$0xff] }
  0x32   :  { %2141 = vmatprep.subr.bf16.mxu1 %v2239_v3  ;;  %v2190_v20 = vpack.c.bf16 %v1475_v19, %v1474_v17  ;;  %v1477_v22 = vld [vmem:[%s2783_s5 + $0x28] sm:$0xff]  ;;  %v1478_v24 = vld [vmem:[%s2783_s5 + $0x30] sm:$0xff]  ;;  %v1479_v25 = vld [vmem:[%s2783_s5 + $0x38] sm:$0xff] }
  0x33   :  { %1923 = vmatmul.mubr.msk.f32.vlgmr.msra.gmra.mrb[10].mxu0 %vm39_vm4, %v1645_v28  ;;  %v2193_v23 = vpack.c.bf16 %v1477_v22, %v1476_v21  ;;  %v2196_v26 = vpack.c.bf16 %v1479_v25, %v1478_v24  ;;  %v1480_v27 = vld [vmem:[%s2783_s5 + $0x40] sm:$0xff]  ;;  %v1481_v28 = vld [vmem:[%s2783_s5 + $0x48] sm:$0xff]  ;;  %v1486_v22 = vld [vmem:[%s2783_s5 + $0x70] sm:$0xff] }
  0x34   :  { %2136 = vmatpush3.bf16.msra.mxu0 %v2135_v29  ;;  %1934 = vmatmul.mubr.msk.f32.vlgmr.msra.gmra.mrb[10].mxu1 %vm39_vm4, %v1652_v30  ;;  %v2199_v29 = vpack.c.bf16 %v1481_v28, %v1480_v27  ;;  %v1482_v30 = vld [vmem:[%s2783_s5 + $0x50] sm:$0xff]  ;;  %v1484_v33 = vld [vmem:[%s2783_s5 + $0x60] sm:$0xff]  ;;  %v1485_v34 = vld [vmem:[%s2783_s5 + $0x68] sm:$0xff] }
  0x35   :  { %2143 = vmatpush3.bf16.msra.mxu1 %v2142_v31  ;;  %2137 = vmatprep.subr.bf16.mxu0 %v2239_v3  ;;  %v1483_v31 = vld [vmem:[%s2783_s5 + $0x58] sm:$0xff]  ;;  %v2205_v35 = vpack.c.bf16 %v1485_v34, %v1484_v33  ;;  %v1687_v17 = vld [vmem:[%s2780_s2] ss:$0 sm:$0xff] }
  0x36   :  { %2144 = vmatprep.subr.bf16.mxu1 %v2239_v3  ;;  %1944 = vmatprep.mubr.msk.f32.mxu0 %vm2240_vm1, %v2241_v11  ;;  %v2202_v32 = vpack.c.bf16 %v1483_v31, %v1482_v30  ;;  %v1688_v25 = vld [vmem:[%s2782_s4] ss:$0 sm:$0xff] }
  0x37   :  { %1955 = vmatprep.mubr.msk.f32.mxu1 %vm2240_vm1, %v2241_v11  ;;  %v1689_v30 = vld [vmem:[%s2784_s6] ss:$0 sm:$0xff] }
  0x38   :  { %2140 = vmatpush3.bf16.msk.msra.mxu0 %vm2316_vm3, %v2138_v36 }
  0x39   :  { %2147 = vmatpush3.bf16.msk.msra.mxu1 %vm2316_vm3, %v2145_v37  ;;  %2148 = vmatprep.subr.bf16.mxu0 %v2239_v3 }
  0x3a   :  { %2155 = vmatprep.subr.bf16.mxu1 %v2239_v3 }
  0x3b   :  { %1945 = vmatmul.mubr.msk.f32.vlgmr.msra.gmra.mrb[12].mxu0 %vm39_vm4, %v1659_v42 }
  0x3c   :  { %2150 = vmatpush3.bf16.msra.mxu0 %v2149_v43  ;;  %1956 = vmatmul.mubr.msk.f32.vlgmr.msra.gmra.mrb[12].mxu1 %vm39_vm4, %v1666_v44 }
  0x3d   :  { %2157 = vmatpush3.bf16.msra.mxu1 %v2156_v45  ;;  %2151 = vmatprep.subr.bf16.mxu0 %v2239_v3 }
  0x3e   :  { %2158 = vmatprep.subr.bf16.mxu1 %v2239_v3  ;;  %1966 = vmatprep.mubr.msk.f32.mxu0 %vm2240_vm1, %v2241_v11 }
  0x3f   :  { %1977 = vmatprep.mubr.msk.f32.mxu1 %vm2240_vm1, %v2241_v11 }
  0x40   :  { %2154 = vmatpush3.bf16.msk.msra.mxu0 %vm2316_vm3, %v2152_v50 }
  0x41   :  { %2161 = vmatpush3.bf16.msk.msra.mxu1 %vm2316_vm3, %v2159_v51  ;;  %2162 = vmatprep.subr.bf16.mxu0 %v2239_v3 }
  0x42   :  { %2186 = vmatprep.subr.bf16.mxu1 %v2239_v3 }
  0x43   :  { %1967 = vmatmul.mubr.msk.f32.vlgmr.msra.gmra.mrb[14].mxu0 %vm39_vm4, %v1673_v52 }
  0x44   :  { %1978 = vmatmul.mubr.msk.f32.vlgmr.msra.gmra.mrb[14].mxu1 %vm39_vm4, %v1680_v53  ;;  %2012 = vmatprep.mubr.msk.f32.mxu0 %vm2240_vm1, %v2241_v11 }
  0x45   :  { %2047 = vmatprep.mubr.msk.f32.mxu1 %vm2240_vm1, %v2241_v11  ;;  %2164 = vmatpush3.bf16.msra.mxu0 %v2163_v55  ;;  %v1381_v11 = vld [vmem:[%s2781_s3 + $0x18] sm:$0xff] }
  0x46   :  { %2165 = vmatprep.subr.bf16.mxu0 %v2239_v3  ;;  %v2166_v57 = vpack.c.bf16 %v1381_v11, %v1380_v56  ;;  %2188 = vmatpush3.bf16.msra.mxu1 %v2187_v18 }
  0x47   :  { %2189 = vmatprep.subr.bf16.mxu1 %v2239_v3 }
  0x49   :  { %2167 = vmatpush3.bf16.msra.mxu0 %v2166_v57 }
  0x4a   :  { %2168 = vmatprep.subr.bf16.mxu0 %v2239_v3  ;;  %2191 = vmatpush3.bf16.msra.mxu1 %v2190_v20 }
  0x4b   :  { %2192 = vmatprep.subr.bf16.mxu1 %v2239_v3 }
  0x4d   :  { %2170 = vmatpush3.bf16.msra.mxu0 %v2169_v60 }
  0x4e   :  { %2171 = vmatprep.subr.bf16.mxu0 %v2239_v3  ;;  %2194 = vmatpush3.bf16.msra.mxu1 %v2193_v23  ;;  %v1487_v23 = vld [vmem:[%s2783_s5 + $0x78] sm:$0xff]  ;;  %s2215_s5 = scalar_lea.vmem %s1573_s16, 32 }
  0x4f   :  { %2195 = vmatprep.subr.bf16.mxu1 %v2239_v3  ;;  %v2208_v24 = vpack.c.bf16 %v1487_v23, %v1486_v22  ;;  %p2216_p0 = scmp.ne.s32.totalorder %s1573_s16, %s2215_s5  ;;  %p2221_p2 = scmp.lt.s32.totalorder %s2215_s5, %s2215_s5 }
  0x51   :  { %2173 = vmatpush3.bf16.msra.mxu0 %v2172_v63  ;;  %p2222_p3 = por %p2221_p2, %p2220_p1 }
  0x52   :  { %2174 = vmatprep.subr.bf16.mxu0 %v2239_v3  ;;  %2197 = vmatpush3.bf16.msra.mxu1 %v2196_v26 }
  0x53   :  { %2198 = vmatprep.subr.bf16.mxu1 %v2239_v3  ;;  %p2223_p4 = pnand %p2222_p3, %p2216_p0 }
  0x55   :  { %2176 = vmatpush3.bf16.msra.mxu0 %v2175_v2 }
  0x56   :  { %2177 = vmatprep.subr.bf16.mxu0 %v2239_v3  ;;  %2200 = vmatpush3.bf16.msra.mxu1 %v2199_v29 }
  0x57   :  { %2201 = vmatprep.subr.bf16.mxu1 %v2239_v3 }
  0x59   :  { %2179 = vmatpush3.bf16.msra.mxu0 %v2178_v6 }
  0x5a   :  { %2180 = vmatprep.subr.bf16.mxu0 %v2239_v3  ;;  %2203 = vmatpush3.bf16.msra.mxu1 %v2202_v32 }
  0x5b   :  { %2204 = vmatprep.subr.bf16.mxu1 %v2239_v3 }
  0x5d   :  { %2182 = vmatpush3.bf16.msra.mxu0 %v2181_v9 }
  0x5e   :  { %2183 = vmatprep.subr.bf16.mxu0 %v2239_v3  ;;  %2206 = vmatpush3.bf16.msra.mxu1 %v2205_v35 }
  0x5f   :  { %2207 = vmatprep.subr.bf16.mxu1 %v2239_v3 }
  0x61   :  { %2185 = vmatpush3.bf16.msra.mxu0 %v2184_v14 }
  0x62   :  { %2209 = vmatpush3.bf16.msra.mxu1 %v2208_v24 }
  0xde   :  { %v113_v36 = vpop.f32.mrb[0].mxu0 }
  0xdf   :  { %v1814_v37 = vpop.f32.mrb[1].mxu0  ;;  %v189_v38 = vpop.f32.mrb[0].mxu1 }
  0xe0   :  { %v190_v39 = vadd.f32 %v189_v38, %v113_v36  ;;  %v1825_v40 = vpop.f32.mrb[1].mxu1 }
  0xe6   :  { %v272_v41 = vpop.f32.mrb[2].mxu0 }
  0xe7   :  { %v276_v42 = vadd.f32 %v272_v41, %v190_v39  ;;  %v1836_v43 = vpop.f32.mrb[3].mxu0  ;;  %v356_v44 = vpop.f32.mrb[2].mxu1 }
  0xe8   :  { %v1847_v45 = vpop.f32.mrb[3].mxu1 }
  0xe9   :  { %v360_v46 = vadd.f32 %v356_v44, %v276_v42 }
  0xee   :  { %v440_v47 = vpop.f32.mrb[4].mxu0 }
  0xef   :  { %v444_v48 = vadd.f32 %v440_v47, %v360_v46  ;;  %v1858_v49 = vpop.f32.mrb[5].mxu0  ;;  %v524_v50 = vpop.f32.mrb[4].mxu1 }
  0xf0   :  { %v1869_v51 = vpop.f32.mrb[5].mxu1 }
  0xf1   :  { %v528_v52 = vadd.f32 %v524_v50, %v444_v48 }
  0xf6   :  { %v608_v53 = vpop.f32.mrb[6].mxu0 }
  0xf7   :  { %v612_v13 = vadd.f32 %v608_v53, %v528_v52  ;;  %v1880_v3 = vpop.f32.mrb[7].mxu0  ;;  %v692_v54 = vpop.f32.mrb[6].mxu1 }
  0xf8   :  { %v1891_v55 = vpop.f32.mrb[7].mxu1 }
  0xf9   :  { %v696_v56 = vadd.f32 %v692_v54, %v612_v13 }
  0xfe   :  { %v776_v11 = vpop.f32.mrb[8].mxu0 }
  0xff   :  { %v780_v57 = vadd.f32 %v776_v11, %v696_v56  ;;  %v1902_v58 = vpop.f32.mrb[9].mxu0  ;;  %v860_v59 = vpop.f32.mrb[8].mxu1 }
 0x100   :  { %v1913_v60 = vpop.f32.mrb[9].mxu1 }
 0x101   :  { %v864_v61 = vadd.f32 %v860_v59, %v780_v57 }
 0x106   :  { %v944_v62 = vpop.f32.mrb[10].mxu0 }
 0x107   :  { %v948_v63 = vadd.f32 %v944_v62, %v864_v61  ;;  %v1924_v0 = vpop.f32.mrb[11].mxu0  ;;  %v1028_v1 = vpop.f32.mrb[10].mxu1 }
 0x108   :  { %v1935_v2 = vpop.f32.mrb[11].mxu1 }
 0x109   :  { %v1032_v4 = vadd.f32 %v1028_v1, %v948_v63 }
 0x10e   :  { %v1112_v5 = vpop.f32.mrb[12].mxu0 }
 0x10f   :  { %v1116_v6 = vadd.f32 %v1112_v5, %v1032_v4  ;;  %v1946_v7 = vpop.f32.mrb[13].mxu0  ;;  %v1196_v8 = vpop.f32.mrb[12].mxu1 }
 0x110   :  { %v1957_v9 = vpop.f32.mrb[13].mxu1 }
 0x111   :  { %v1200_v10 = vadd.f32 %v1196_v8, %v1116_v6 }
 0x116   :  { %v1280_v12 = vpop.f32.mrb[14].mxu0 }
 0x117   :  { %v1284_v14 = vadd.f32 %v1280_v12, %v1200_v10  ;;  %v1968_v15 = vpop.f32.mrb[15].mxu0  ;;  %v1364_v16 = vpop.f32.mrb[14].mxu1 }
 0x118   :  { %v1979_v18 = vpop.f32.mrb[15].mxu1 }
 0x119   :  { %v1368_v19 = vadd.f32 %v1364_v16, %v1284_v14 }
 0x11b   :  { %v1376_v20 = vadd.f32 %v1687_v17, %v1368_v19 }
 0x11d   :  { %v1377_v21 = vmax.f32 %v1376_v20, 0.0 }
 0x11f   :  { %2013 = vmatmul.mubr.f32.vlgmr.msra.gmra.mrb[16].mxu0 %v1377_v21 }
 0x1f2   :  { %v1467_v26 = vpop.f32.mrb[16].mxu0 }
 0x1f3   :  { %v1468_v27 = vadd.f32 %v1688_v25, %v1467_v26  ;;  %v2014_v28 = vpop.f32.mrb[17].mxu0 }
 0x1f5   :  { %v1471_v29 = vmax.f32 %v1468_v27, 0.0 }
 0x1f7   :  { %2048 = vmatmul.mubr.f32.vlgmr.msra.gmra.mrb[16].mxu1 %v1471_v29 }
 0x2ca   :  { %v1561_v31 = vpop.f32.mrb[16].mxu1 }
 0x2cb   :  { %v1562_v32 = vadd.f32 %v1689_v30, %v1561_v31  ;;  %v2049_v33 = vpop.f32.mrb[17].mxu1 }
 0x2cd   :  { %1565 = vst [vmem:[#allocation2] sm:$0x3] %v1562_v32 }
 0x2ce   :  { %2226 = shalt.err (!%p2223_p4)
}
 0x2cf   :  { %s2227_s18 = scalar_lea.hbm %s2785_s7, 32 }
 0x2d0   :  { %p2228_p5 = scmp.ne.s32.totalorder %s2785_s7, %s2227_s18  ;;  %p2231_p6 = scmp.lt.u32.totalorder %s2227_s18, %s2785_s7 }
 0x2d2   :  { %p2233_p7 = pnand %p2231_p6, %p2228_p5 }
 0x2d4   :  { %2236 = shalt.err (!%p2233_p7)
}
 0x2d5   :  { %1575 = dma.vmem_to_hbm [thread:$0]  %s1573_s16, 32, %s2785_s7, [#allocation3]  }
 0x2d6   :  { %2237 = dma.done.wait [#allocation3], 32  }
 0x2d7   :  { %2238 = vsyncadd [#allocation3], 4294967264 }
 0x2d8   :  { %1579 = vsyncpa [#allocation3], 1 }

</bundles_post_ra>
